<compile_context>
chip_gen: v5e
topology: v5e:2x2
jax: 0.10.0
libtpu: 0.0.40
codegen_flags: <defaults>
</compile_context>

<pallas_src>
import functools

import jax
import jax.numpy as jnp
import numpy as np
from jax import lax
from jax.experimental import pallas as pl
from jax.experimental.pallas import tpu as pltpu

EPS = 1e-3  # BatchNorm2d eps


# ---------------------------------------------------------------------------
# in-kernel helpers (all shapes / shifts are static Python ints)
# ---------------------------------------------------------------------------
def _row_shift(x, o):
    """s[r, :] = x[r + o, :] with zero fill where r + o is out of range."""
    if o == 0:
        return x
    R, C = x.shape
    z = jnp.zeros((abs(o), C), x.dtype)
    if o > 0:
        return jnp.concatenate([x[o:, :], z], axis=0)
    return jnp.concatenate([z, x[:R + o, :]], axis=0)


def _col_shift(x, o, W):
    """Shift by o columns inside each image row of width W (zero padded)."""
    if o == 0:
        return x
    s = _row_shift(x, o)                                   # flattened shift ...
    col = lax.broadcasted_iota(jnp.int32, x.shape, 0) % W  # ... mask row wrap
    return jnp.where((col + o >= 0) & (col + o < W), s, 0.0)


def _conv3x1(x, w_ref, W, dil):
    """Vertical 3x1 conv: 3 accumulated MXU matmuls. w_ref: (3, Cin, Cout)."""
    acc = jnp.dot(x, w_ref[1], preferred_element_type=jnp.float32)
    acc += jnp.dot(_row_shift(x, -dil * W), w_ref[0],
                   preferred_element_type=jnp.float32)
    acc += jnp.dot(_row_shift(x, +dil * W), w_ref[2],
                   preferred_element_type=jnp.float32)
    return acc


def _conv1x3(x, w_ref, W, dil):
    """Horizontal 1x3 conv: 3 accumulated MXU matmuls. w_ref: (3, Cin, Cout)."""
    acc = jnp.dot(x, w_ref[1], preferred_element_type=jnp.float32)
    acc += jnp.dot(_col_shift(x, -dil, W), w_ref[0],
                   preferred_element_type=jnp.float32)
    acc += jnp.dot(_col_shift(x, +dil, W), w_ref[2],
                   preferred_element_type=jnp.float32)
    return acc


def _channel_stats(y):
    """(1,C) sum and (1,C) sum-of-squares stacked into (2,C)."""
    return jnp.concatenate([jnp.sum(y, axis=0, keepdims=True),
                            jnp.sum(y * y, axis=0, keepdims=True)], axis=0)


# ---------------------------------------------------------------------------
# stage kernels (grid over the batch axis; one image tile of HW rows per step)
# ---------------------------------------------------------------------------
def _stage1_kernel(W, x_ref, w1_ref, b1_ref, w2_ref, b2_ref, t1_ref, stats_ref):
    # conv3x1_1 -> relu -> conv1x3_1 ; accumulate bn1 sum / sumsq across grid.
    @pl.when(pl.program_id(0) == 0)
    def _():
        stats_ref[...] = jnp.zeros_like(stats_ref)

    x = x_ref[...]                                               # (HW, C)
    t = jnp.maximum(_conv3x1(x, w1_ref, W, 1) + b1_ref[...], 0.0)
    u = _conv1x3(t, w2_ref, W, 1) + b2_ref[...]
    t1_ref[...] = u
    stats_ref[...] += _channel_stats(u)


def _stage2_kernel(W, dil, t1_ref, sc1_ref, sh1_ref, w3_ref, b3_ref,
                   w4_ref, b4_ref, t2_ref, stats_ref):
    # bn1 affine -> relu -> conv3x1_2 -> relu -> conv1x3_2 ; accumulate bn2 stats.
    @pl.when(pl.program_id(0) == 0)
    def _():
        stats_ref[...] = jnp.zeros_like(stats_ref)

    v = jnp.maximum(t1_ref[...] * sc1_ref[...] + sh1_ref[...], 0.0)
    p = jnp.maximum(_conv3x1(v, w3_ref, W, dil) + b3_ref[...], 0.0)
    q = _conv1x3(p, w4_ref, W, dil) + b4_ref[...]
    t2_ref[...] = q
    stats_ref[...] += _channel_stats(q)


def _stage3_kernel(t2_ref, x_ref, sc2_ref, sh2_ref, o_ref):
    # bn2 affine -> (dropout p=0 skipped) -> residual add -> relu.
    o_ref[...] = jnp.maximum(
        t2_ref[...] * sc2_ref[...] + sh2_ref[...] + x_ref[...], 0.0)


# ---------------------------------------------------------------------------
# wrapper
# ---------------------------------------------------------------------------
def _bn_affine(stats, gamma, beta, count):
    """Fold training-mode BatchNorm (batch stats, biased var) into scale/shift."""
    mean = stats[0] / count
    var = stats[1] / count - mean * mean
    scale = gamma * lax.rsqrt(var + EPS)
    shift = beta - mean * scale
    c = gamma.shape[0]
    return scale.reshape(1, c), shift.reshape(1, c)


def non_bottleneck_1d_forward(x_nchw, w3x1_1, b3x1_1, w1x3_1, b1x3_1,
                              gamma1, beta1, w3x1_2, b3x1_2, w1x3_2, b1x3_2,
                              gamma2, beta2, *, dilated=1, dropprob=0.0):
    """x_nchw: (N, C, H, W) float32 -> (N, C, H, W) float32."""
    # TODO(synk): Dropout2d for dropprob > 0 is not modeled (PyTorch RNG is not
    # reproducible here); with p == 0 PyTorch skips it, which is what we match.
    # TODO(synk): BatchNorm running_mean/running_var updates are stateful and
    # not modeled (they do not affect the training-mode forward output).
    N, C, H, W = x_nchw.shape
    HW = H * W
    NP = N * HW

    # rows of (H*W) pixels with channels on the lane axis
    x = jnp.transpose(x_nchw, (0, 2, 3, 1)).reshape(NP, C)

    # tap-major weights: (3, Cin, Cout)
    w1t = jnp.transpose(w3x1_1[:, :, :, 0], (2, 1, 0))
    w2t = jnp.transpose(w1x3_1[:, :, 0, :], (2, 1, 0))
    w3t = jnp.transpose(w3x1_2[:, :, :, 0], (2, 1, 0))
    w4t = jnp.transpose(w1x3_2[:, :, 0, :], (2, 1, 0))

    row_spec = pl.BlockSpec((HW, C), lambda n: (n, 0))
    tap_spec = pl.BlockSpec((3, C, C), lambda n: (0, 0, 0))
    vec_spec = pl.BlockSpec((1, C), lambda n: (0, 0))
    stats_spec = pl.BlockSpec((2, C), lambda n: (0, 0))
    cparams_acc = pltpu.CompilerParams(
        dimension_semantics=("arbitrary",),         # stats accumulator axis
        vmem_limit_bytes=32 * 1024 * 1024)
    cparams_par = pltpu.CompilerParams(
        dimension_semantics=("parallel",),          # elementwise -> megacore OK
        vmem_limit_bytes=32 * 1024 * 1024)

    # stage 1: conv3x1_1 + relu + conv1x3_1, bn1 stats accumulation
    t1, stats1 = pl.pallas_call(
        functools.partial(_stage1_kernel, W),
        out_shape=(jax.ShapeDtypeStruct((NP, C), jnp.float32),
                   jax.ShapeDtypeStruct((2, C), jnp.float32)),
        grid=(N,),
        in_specs=[row_spec, tap_spec, vec_spec, tap_spec, vec_spec],
        out_specs=(row_spec, stats_spec),
        compiler_params=cparams_acc,
    )(x, w1t, b3x1_1.reshape(1, C), w2t, b1x3_1.reshape(1, C))

    sc1, sh1 = _bn_affine(stats1, gamma1, beta1, NP)

    # stage 2: bn1 + relu + conv3x1_2 + relu + conv1x3_2, bn2 stats accumulation
    t2, stats2 = pl.pallas_call(
        functools.partial(_stage2_kernel, W, dilated),
        out_shape=(jax.ShapeDtypeStruct((NP, C), jnp.float32),
                   jax.ShapeDtypeStruct((2, C), jnp.float32)),
        grid=(N,),
        in_specs=[row_spec, vec_spec, vec_spec, tap_spec, vec_spec,
                  tap_spec, vec_spec],
        out_specs=(row_spec, stats_spec),
        compiler_params=cparams_acc,
    )(t1, sc1, sh1, w3t, b3x1_2.reshape(1, C), w4t, b1x3_2.reshape(1, C))

    sc2, sh2 = _bn_affine(stats2, gamma2, beta2, NP)

    # stage 3: bn2 + residual add + relu
    out = pl.pallas_call(
        _stage3_kernel,
        out_shape=jax.ShapeDtypeStruct((NP, C), jnp.float32),
        grid=(N,),
        in_specs=[row_spec, row_spec, vec_spec, vec_spec],
        out_specs=row_spec,
        compiler_params=cparams_par,
    )(t2, x, sc2, sh2)

    return jnp.transpose(out.reshape(N, H, W, C), (0, 3, 1, 2))


# ---------------------------------------------------------------------------
# pure-JAX reference (matches the PyTorch forward in training mode)
# ---------------------------------------------------------------------------
def _ref_conv(x, w, b, pad_hw, dil_hw):
    return lax.conv_general_dilated(
        x, w, window_strides=(1, 1), padding=pad_hw, rhs_dilation=dil_hw,
        dimension_numbers=('NCHW', 'OIHW', 'NCHW')) + b[None, :, None, None]


def ref_forward(x, w1, b1, w2, b2, g1, be1, w3, b3, w4, b4, g2, be2, dilated):
    def bn(y, g, b):
        mean = jnp.mean(y, axis=(0, 2, 3), keepdims=True)
        var = jnp.mean((y - mean) ** 2, axis=(0, 2, 3), keepdims=True)
        return ((y - mean) / jnp.sqrt(var + EPS)) * g[None, :, None, None] \
            + b[None, :, None, None]

    d = dilated
    o = jnp.maximum(_ref_conv(x, w1, b1, ((1, 1), (0, 0)), (1, 1)), 0.0)
    o = _ref_conv(o, w2, b2, ((0, 0), (1, 1)), (1, 1))
    o = jnp.maximum(bn(o, g1, be1), 0.0)
    o = jnp.maximum(_ref_conv(o, w3, b3, ((d, d), (0, 0)), (d, 1)), 0.0)
    o = _ref_conv(o, w4, b4, ((0, 0), (d, d)), (1, d))
    o = bn(o, g2, be2)
    return jnp.maximum(o + x, 0.0)


if __name__ == "__main__":
    # ERFNet-style shapes, kept small: chann=128 (lane-dense), dilated=2, p=0.
    N, C, H, W = 2, 128, 16, 16
    dilated = 2
    dropprob = 0.0

    key = jax.random.PRNGKey(0)
    ks = jax.random.split(key, 13)
    s = 0.05
    x = jax.random.normal(ks[0], (N, C, H, W), jnp.float32)
    w3x1_1 = s * jax.random.normal(ks[1], (C, C, 3, 1), jnp.float32)
    b3x1_1 = s * jax.random.normal(ks[2], (C,), jnp.float32)
    w1x3_1 = s * jax.random.normal(ks[3], (C, C, 1, 3), jnp.float32)
    b1x3_1 = s * jax.random.normal(ks[4], (C,), jnp.float32)
    gamma1 = 1.0 + 0.1 * jax.random.normal(ks[5], (C,), jnp.float32)
    beta1 = 0.1 * jax.random.normal(ks[6], (C,), jnp.float32)
    w3x1_2 = s * jax.random.normal(ks[7], (C, C, 3, 1), jnp.float32)
    b3x1_2 = s * jax.random.normal(ks[8], (C,), jnp.float32)
    w1x3_2 = s * jax.random.normal(ks[9], (C, C, 1, 3), jnp.float32)
    b1x3_2 = s * jax.random.normal(ks[10], (C,), jnp.float32)
    gamma2 = 1.0 + 0.1 * jax.random.normal(ks[11], (C,), jnp.float32)
    beta2 = 0.1 * jax.random.normal(ks[12], (C,), jnp.float32)

    out = jax.block_until_ready(non_bottleneck_1d_forward(
        x, w3x1_1, b3x1_1, w1x3_1, b1x3_1, gamma1, beta1,
        w3x1_2, b3x1_2, w1x3_2, b1x3_2, gamma2, beta2,
        dilated=dilated, dropprob=dropprob))
    ref = jax.block_until_ready(ref_forward(
        x, w3x1_1, b3x1_1, w1x3_1, b1x3_1, gamma1, beta1,
        w3x1_2, b3x1_2, w1x3_2, b1x3_2, gamma2, beta2, dilated))

    assert out.shape == (N, C, H, W), out.shape
    np.testing.assert_allclose(np.asarray(out), np.asarray(ref),
                               rtol=1e-3, atol=1e-3)
    print("KERNEL_OK")
</pallas_src>

<mosaic_0001>
module attributes {stable_mosaic.version = 11 : i64} {
  func.func @_stage1_kernel(%arg0: i32, %arg1: memref<256x128xf32, #tpu.memory_space<vmem>>, %arg2: memref<3x128x128xf32, #tpu.memory_space<vmem>>, %arg3: memref<1x128xf32, #tpu.memory_space<vmem>>, %arg4: memref<3x128x128xf32, #tpu.memory_space<vmem>>, %arg5: memref<1x128xf32, #tpu.memory_space<vmem>>, %arg6: memref<256x128xf32, #tpu.memory_space<vmem>>, %arg7: memref<2x128xf32, #tpu.memory_space<vmem>>) attributes {dimension_semantics = [#tpu.dimension_semantics<arbitrary>], iteration_bounds = array<i64: 2>, scalar_prefetch = 0 : i64, scratch_operands = 0 : i64, tpu.core_type = #tpu.core_type<tc>, window_params = [{transform_indices = @transform_0, window_bounds = array<i64: 256, 128>}, {pipeline_mode = #tpu.pipeline_mode<synchronous>, transform_indices = @transform_1, window_bounds = array<i64: 3, 128, 128>}, {pipeline_mode = #tpu.pipeline_mode<synchronous>, transform_indices = @transform_2, window_bounds = array<i64: 1, 128>}, {pipeline_mode = #tpu.pipeline_mode<synchronous>, transform_indices = @transform_3, window_bounds = array<i64: 3, 128, 128>}, {pipeline_mode = #tpu.pipeline_mode<synchronous>, transform_indices = @transform_4, window_bounds = array<i64: 1, 128>}, {transform_indices = @transform_5, window_bounds = array<i64: 256, 128>}, {pipeline_mode = #tpu.pipeline_mode<synchronous>, transform_indices = @transform_6, window_bounds = array<i64: 2, 128>}]} {
    %c0_i32 = arith.constant 0 : i32
    %0 = arith.cmpi eq, %arg0, %c0_i32 : i32
    %1 = arith.extui %0 : i1 to i32
    %c0_i32_0 = arith.constant 0 : i32
    %2 = arith.cmpi ne, %1, %c0_i32_0 : i32
    scf.if %2 {
      %cst_59 = arith.constant 0.000000e+00 : f32
      %112 = vector.broadcast %cst_59 : f32 to vector<2x128xf32>
      %c0_60 = arith.constant 0 : index
      %c0_61 = arith.constant 0 : index
      %113 = vector.load %arg7[%c0_60, %c0_61] : memref<2x128xf32, #tpu.memory_space<vmem>>, vector<2x128xf32>
      tpu.vector_store %arg7[%c0_60, %c0_61], %112 {strides = array<i32>} : memref<2x128xf32, #tpu.memory_space<vmem>>, vector<2x128xf32>,
    } else {
    }
    %c0 = arith.constant 0 : index
    %c0_1 = arith.constant 0 : index
    %3 = vector.load %arg1[%c0, %c0_1] : memref<256x128xf32, #tpu.memory_space<vmem>>, vector<256x128xf32>
    %c1 = arith.constant 1 : index
    %c0_2 = arith.constant 0 : index
    %c0_3 = arith.constant 0 : index
    %4 = vector.load %arg2[%c1, %c0_2, %c0_3] : memref<3x128x128xf32, #tpu.memory_space<vmem>>, vector<1x128x128xf32>
    %5 = vector.shape_cast %4 : vector<1x128x128xf32> to vector<128x128xf32>
    %cst = arith.constant dense<0.000000e+00> : vector<256x128xf32>
    %6 = tpu.matmul %3, %5, %cst {dimension_numbers = #tpu.dot_dimension_numbers<[1], [0], [0], [1], [0, 0, 1, 1], [], []>} : vector<256x128xf32>, vector<128x128xf32>, vector<256x128xf32> -> vector<256x128xf32>
    %cst_4 = arith.constant 0.000000e+00 : f32
    %7 = vector.broadcast %cst_4 : f32 to vector<16x128xf32>
    %8 = vector.extract_strided_slice %3 {offsets = [0, 0], sizes = [240, 128], strides = [1, 1]} : vector<256x128xf32> to vector<240x128xf32>
    %9 = tpu.concatenate %7, %8 in 0 : vector<16x128xf32>, vector<240x128xf32> -> vector<256x128xf32>
    %c0_5 = arith.constant 0 : index
    %c0_6 = arith.constant 0 : index
    %c0_7 = arith.constant 0 : index
    %10 = vector.load %arg2[%c0_5, %c0_6, %c0_7] : memref<3x128x128xf32, #tpu.memory_space<vmem>>, vector<1x128x128xf32>
    %11 = vector.shape_cast %10 : vector<1x128x128xf32> to vector<128x128xf32>
    %cst_8 = arith.constant dense<0.000000e+00> : vector<256x128xf32>
    %12 = tpu.matmul %9, %11, %cst_8 {dimension_numbers = #tpu.dot_dimension_numbers<[1], [0], [0], [1], [0, 0, 1, 1], [], []>} : vector<256x128xf32>, vector<128x128xf32>, vector<256x128xf32> -> vector<256x128xf32>
    %13 = arith.addf %6, %12 : vector<256x128xf32>
    %cst_9 = arith.constant 0.000000e+00 : f32
    %14 = vector.broadcast %cst_9 : f32 to vector<16x128xf32>
    %15 = vector.extract_strided_slice %3 {offsets = [16, 0], sizes = [240, 128], strides = [1, 1]} : vector<256x128xf32> to vector<240x128xf32>
    %16 = tpu.concatenate %15, %14 in 0 : vector<240x128xf32>, vector<16x128xf32> -> vector<256x128xf32>
    %c2 = arith.constant 2 : index
    %c0_10 = arith.constant 0 : index
    %c0_11 = arith.constant 0 : index
    %17 = vector.load %arg2[%c2, %c0_10, %c0_11] : memref<3x128x128xf32, #tpu.memory_space<vmem>>, vector<1x128x128xf32>
    %18 = vector.shape_cast %17 : vector<1x128x128xf32> to vector<128x128xf32>
    %cst_12 = arith.constant dense<0.000000e+00> : vector<256x128xf32>
    %19 = tpu.matmul %16, %18, %cst_12 {dimension_numbers = #tpu.dot_dimension_numbers<[1], [0], [0], [1], [0, 0, 1, 1], [], []>} : vector<256x128xf32>, vector<128x128xf32>, vector<256x128xf32> -> vector<256x128xf32>
    %20 = arith.addf %13, %19 : vector<256x128xf32>
    %c0_13 = arith.constant 0 : index
    %c0_14 = arith.constant 0 : index
    %21 = vector.load %arg3[%c0_13, %c0_14] : memref<1x128xf32, #tpu.memory_space<vmem>>, vector<1x128xf32>
    %22 = vector.broadcast %21 : vector<1x128xf32> to vector<256x128xf32>
    %23 = arith.addf %20, %22 : vector<256x128xf32>
    %cst_15 = arith.constant 0.000000e+00 : f32
    %24 = vector.broadcast %cst_15 : f32 to vector<256x128xf32>
    %25 = arith.maximumf %23, %24 : vector<256x128xf32>
    %c1_16 = arith.constant 1 : index
    %c0_17 = arith.constant 0 : index
    %c0_18 = arith.constant 0 : index
    %26 = vector.load %arg4[%c1_16, %c0_17, %c0_18] : memref<3x128x128xf32, #tpu.memory_space<vmem>>, vector<1x128x128xf32>
    %27 = vector.shape_cast %26 : vector<1x128x128xf32> to vector<128x128xf32>
    %cst_19 = arith.constant dense<0.000000e+00> : vector<256x128xf32>
    %28 = tpu.matmul %25, %27, %cst_19 {dimension_numbers = #tpu.dot_dimension_numbers<[1], [0], [0], [1], [0, 0, 1, 1], [], []>} : vector<256x128xf32>, vector<128x128xf32>, vector<256x128xf32> -> vector<256x128xf32>
    %cst_20 = arith.constant 0.000000e+00 : f32
    %29 = vector.broadcast %cst_20 : f32 to vector<1x128xf32>
    %30 = vector.extract_strided_slice %25 {offsets = [0, 0], sizes = [255, 128], strides = [1, 1]} : vector<256x128xf32> to vector<255x128xf32>
    %31 = tpu.concatenate %29, %30 in 0 : vector<1x128xf32>, vector<255x128xf32> -> vector<256x128xf32>
    %32 = tpu.iota {dimensions = array<i32: 0>} : vector<256x128xi32>
    %c16_i32 = arith.constant 16 : i32
    %c0_i32_21 = arith.constant 0 : i32
    %33 = arith.cmpi eq, %c16_i32, %c0_i32_21 : i32
    %c1_i32 = arith.constant 1 : i32
    %34 = arith.select %33, %c1_i32, %c16_i32 : i32
    %35 = vector.broadcast %34 : i32 to vector<256x128xi32>
    %36 = arith.remsi %32, %35 : vector<256x128xi32>
    %c0_i32_22 = arith.constant 0 : i32
    %37 = vector.broadcast %c0_i32_22 : i32 to vector<256x128xi32>
    %38 = arith.cmpi ne, %36, %37 : vector<256x128xi32>
    %c0_i32_23 = arith.constant 0 : i32
    %39 = vector.broadcast %c0_i32_23 : i32 to vector<256x128xi32>
    %40 = arith.cmpi slt, %36, %39 : vector<256x128xi32>
    %c0_i32_24 = arith.constant 0 : i32
    %41 = arith.cmpi slt, %34, %c0_i32_24 : i32
    %42 = vector.broadcast %41 : i1 to vector<256x128xi1>
    %43 = vector.broadcast %42 : vector<256x128xi1> to vector<256x128xi1>
    %44 = arith.xori %40, %43 : vector<256x128xi1>
    %45 = arith.andi %44, %38 : vector<256x128xi1>
    %46 = vector.broadcast %34 : i32 to vector<256x128xi32>
    %47 = arith.addi %36, %46 : vector<256x128xi32>
    %48 = arith.select %45, %47, %36 : vector<256x128xi1>, vector<256x128xi32>
    %c-1_i32 = arith.constant -1 : i32
    %49 = vector.broadcast %c-1_i32 : i32 to vector<256x128xi32>
    %50 = arith.addi %48, %49 : vector<256x128xi32>
    %c0_i32_25 = arith.constant 0 : i32
    %51 = vector.broadcast %c0_i32_25 : i32 to vector<256x128xi32>
    %52 = arith.cmpi sge, %50, %51 : vector<256x128xi32>
    %c-1_i32_26 = arith.constant -1 : i32
    %53 = vector.broadcast %c-1_i32_26 : i32 to vector<256x128xi32>
    %54 = arith.addi %48, %53 : vector<256x128xi32>
    %c16_i32_27 = arith.constant 16 : i32
    %55 = vector.broadcast %c16_i32_27 : i32 to vector<256x128xi32>
    %56 = arith.cmpi slt, %54, %55 : vector<256x128xi32>
    %57 = arith.andi %52, %56 : vector<256x128xi1>
    %cst_28 = arith.constant 0.000000e+00 : f32
    %58 = vector.broadcast %cst_28 : f32 to vector<256x128xf32>
    %59 = arith.select %57, %31, %58 : vector<256x128xi1>, vector<256x128xf32>
    %c0_29 = arith.constant 0 : index
    %c0_30 = arith.constant 0 : index
    %c0_31 = arith.constant 0 : index
    %60 = vector.load %arg4[%c0_29, %c0_30, %c0_31] : memref<3x128x128xf32, #tpu.memory_space<vmem>>, vector<1x128x128xf32>
    %61 = vector.shape_cast %60 : vector<1x128x128xf32> to vector<128x128xf32>
    %cst_32 = arith.constant dense<0.000000e+00> : vector<256x128xf32>
    %62 = tpu.matmul %59, %61, %cst_32 {dimension_numbers = #tpu.dot_dimension_numbers<[1], [0], [0], [1], [0, 0, 1, 1], [], []>} : vector<256x128xf32>, vector<128x128xf32>, vector<256x128xf32> -> vector<256x128xf32>
    %63 = arith.addf %28, %62 : vector<256x128xf32>
    %cst_33 = arith.constant 0.000000e+00 : f32
    %64 = vector.broadcast %cst_33 : f32 to vector<1x128xf32>
    %65 = vector.extract_strided_slice %25 {offsets = [1, 0], sizes = [255, 128], strides = [1, 1]} : vector<256x128xf32> to vector<255x128xf32>
    %66 = tpu.concatenate %65, %64 in 0 : vector<255x128xf32>, vector<1x128xf32> -> vector<256x128xf32>
    %67 = tpu.iota {dimensions = array<i32: 0>} : vector<256x128xi32>
    %c16_i32_34 = arith.constant 16 : i32
    %c0_i32_35 = arith.constant 0 : i32
    %68 = arith.cmpi eq, %c16_i32_34, %c0_i32_35 : i32
    %c1_i32_36 = arith.constant 1 : i32
    %69 = arith.select %68, %c1_i32_36, %c16_i32_34 : i32
    %70 = vector.broadcast %69 : i32 to vector<256x128xi32>
    %71 = arith.remsi %67, %70 : vector<256x128xi32>
    %c0_i32_37 = arith.constant 0 : i32
    %72 = vector.broadcast %c0_i32_37 : i32 to vector<256x128xi32>
    %73 = arith.cmpi ne, %71, %72 : vector<256x128xi32>
    %c0_i32_38 = arith.constant 0 : i32
    %74 = vector.broadcast %c0_i32_38 : i32 to vector<256x128xi32>
    %75 = arith.cmpi slt, %71, %74 : vector<256x128xi32>
    %c0_i32_39 = arith.constant 0 : i32
    %76 = arith.cmpi slt, %69, %c0_i32_39 : i32
    %77 = vector.broadcast %76 : i1 to vector<256x128xi1>
    %78 = vector.broadcast %77 : vector<256x128xi1> to vector<256x128xi1>
    %79 = arith.xori %75, %78 : vector<256x128xi1>
    %80 = arith.andi %79, %73 : vector<256x128xi1>
    %81 = vector.broadcast %69 : i32 to vector<256x128xi32>
    %82 = arith.addi %71, %81 : vector<256x128xi32>
    %83 = arith.select %80, %82, %71 : vector<256x128xi1>, vector<256x128xi32>
    %c1_i32_40 = arith.constant 1 : i32
    %84 = vector.broadcast %c1_i32_40 : i32 to vector<256x128xi32>
    %85 = arith.addi %83, %84 : vector<256x128xi32>
    %c0_i32_41 = arith.constant 0 : i32
    %86 = vector.broadcast %c0_i32_41 : i32 to vector<256x128xi32>
    %87 = arith.cmpi sge, %85, %86 : vector<256x128xi32>
    %c1_i32_42 = arith.constant 1 : i32
    %88 = vector.broadcast %c1_i32_42 : i32 to vector<256x128xi32>
    %89 = arith.addi %83, %88 : vector<256x128xi32>
    %c16_i32_43 = arith.constant 16 : i32
    %90 = vector.broadcast %c16_i32_43 : i32 to vector<256x128xi32>
    %91 = arith.cmpi slt, %89, %90 : vector<256x128xi32>
    %92 = arith.andi %87, %91 : vector<256x128xi1>
    %cst_44 = arith.constant 0.000000e+00 : f32
    %93 = vector.broadcast %cst_44 : f32 to vector<256x128xf32>
    %94 = arith.select %92, %66, %93 : vector<256x128xi1>, vector<256x128xf32>
    %c2_45 = arith.constant 2 : index
    %c0_46 = arith.constant 0 : index
    %c0_47 = arith.constant 0 : index
    %95 = vector.load %arg4[%c2_45, %c0_46, %c0_47] : memref<3x128x128xf32, #tpu.memory_space<vmem>>, vector<1x128x128xf32>
    %96 = vector.shape_cast %95 : vector<1x128x128xf32> to vector<128x128xf32>
    %cst_48 = arith.constant dense<0.000000e+00> : vector<256x128xf32>
    %97 = tpu.matmul %94, %96, %cst_48 {dimension_numbers = #tpu.dot_dimension_numbers<[1], [0], [0], [1], [0, 0, 1, 1], [], []>} : vector<256x128xf32>, vector<128x128xf32>, vector<256x128xf32> -> vector<256x128xf32>
    %98 = arith.addf %63, %97 : vector<256x128xf32>
    %c0_49 = arith.constant 0 : index
    %c0_50 = arith.constant 0 : index
    %99 = vector.load %arg5[%c0_49, %c0_50] : memref<1x128xf32, #tpu.memory_space<vmem>>, vector<1x128xf32>
    %100 = vector.broadcast %99 : vector<1x128xf32> to vector<256x128xf32>
    %101 = arith.addf %98, %100 : vector<256x128xf32>
    %c0_51 = arith.constant 0 : index
    %c0_52 = arith.constant 0 : index
    %102 = vector.load %arg6[%c0_51, %c0_52] : memref<256x128xf32, #tpu.memory_space<vmem>>, vector<256x128xf32>
    tpu.vector_store %arg6[%c0_51, %c0_52], %101 {strides = array<i32>} : memref<256x128xf32, #tpu.memory_space<vmem>>, vector<256x128xf32>,
    %c0_53 = arith.constant 0 : index
    %c0_54 = arith.constant 0 : index
    %103 = vector.load %arg7[%c0_53, %c0_54] : memref<2x128xf32, #tpu.memory_space<vmem>>, vector<2x128xf32>
    %cst_55 = arith.constant dense<0.000000e+00> : vector<128xf32>
    %104 = vector.multi_reduction <add>, %101, %cst_55 [0] : vector<256x128xf32> to vector<128xf32>
    %105 = vector.shape_cast %104 : vector<128xf32> to vector<1x128xf32>
    %106 = arith.mulf %101, %101 : vector<256x128xf32>
    %cst_56 = arith.constant dense<0.000000e+00> : vector<128xf32>
    %107 = vector.multi_reduction <add>, %106, %cst_56 [0] : vector<256x128xf32> to vector<128xf32>
    %108 = vector.shape_cast %107 : vector<128xf32> to vector<1x128xf32>
    %109 = tpu.concatenate %105, %108 in 0 : vector<1x128xf32>, vector<1x128xf32> -> vector<2x128xf32>
    %110 = arith.addf %103, %109 : vector<2x128xf32>
    %c0_57 = arith.constant 0 : index
    %c0_58 = arith.constant 0 : index
    %111 = vector.load %arg7[%c0_57, %c0_58] : memref<2x128xf32, #tpu.memory_space<vmem>>, vector<2x128xf32>
    tpu.vector_store %arg7[%c0_57, %c0_58], %110 {strides = array<i32>} : memref<2x128xf32, #tpu.memory_space<vmem>>, vector<2x128xf32>,
    return
  }
  func.func @transform_0(%arg0: i32) -> (i32, i32) {
    %c0_i32 = arith.constant 0 : i32
    %c0_i32_0 = arith.constant 0 : i32
    return %arg0, %c0_i32 : i32, i32
  }
  func.func @transform_1(%arg0: i32) -> (i32, i32, i32) {
    %c0_i32 = arith.constant 0 : i32
    %c0_i32_0 = arith.constant 0 : i32
    %c0_i32_1 = arith.constant 0 : i32
    %c0_i32_2 = arith.constant 0 : i32
    return %c0_i32, %c0_i32_0, %c0_i32_1 : i32, i32, i32
  }
  func.func @transform_2(%arg0: i32) -> (i32, i32) {
    %c0_i32 = arith.constant 0 : i32
    %c0_i32_0 = arith.constant 0 : i32
    %c0_i32_1 = arith.constant 0 : i32
    return %c0_i32, %c0_i32_0 : i32, i32
  }
  func.func @transform_3(%arg0: i32) -> (i32, i32, i32) {
    %c0_i32 = arith.constant 0 : i32
    %c0_i32_0 = arith.constant 0 : i32
    %c0_i32_1 = arith.constant 0 : i32
    %c0_i32_2 = arith.constant 0 : i32
    return %c0_i32, %c0_i32_0, %c0_i32_1 : i32, i32, i32
  }
  func.func @transform_4(%arg0: i32) -> (i32, i32) {
    %c0_i32 = arith.constant 0 : i32
    %c0_i32_0 = arith.constant 0 : i32
    %c0_i32_1 = arith.constant 0 : i32
    return %c0_i32, %c0_i32_0 : i32, i32
  }
  func.func @transform_5(%arg0: i32) -> (i32, i32) {
    %c0_i32 = arith.constant 0 : i32
    %c0_i32_0 = arith.constant 0 : i32
    return %arg0, %c0_i32 : i32, i32
  }
  func.func @transform_6(%arg0: i32) -> (i32, i32) {
    %c0_i32 = arith.constant 0 : i32
    %c0_i32_0 = arith.constant 0 : i32
    %c0_i32_1 = arith.constant 0 : i32
    return %c0_i32, %c0_i32_0 : i32, i32
  }
}

</mosaic_0001>

<bundles_post_ra>
// kernel: tpu_custom_call.1
= control target key start
LH: loop header
LB: loop body
LE: loop exit
PB: predicated region body
PF: predicated region fallthrough
CT: control target
= control target key end

     0   :  { %12 = vsyncpa [#allocation3], 0  ;;  %s3536_s0 = inlined_call_operand.hbm [shape: f32[512,128], index: 0, kind: input, shape index: {}]   ;;  %s3537_s1 = inlined_call_operand.hbm [shape: f32[3,128,128], index: 1, kind: input, shape index: {}]   ;;  %s3538_s2 = inlined_call_operand.vmem [shape: f32[1,128], index: 2, kind: input, shape index: {}]   ;;  %s3539_s3 = inlined_call_operand.hbm [shape: f32[3,128,128], index: 3, kind: input, shape index: {}]   ;;  %s3540_s4 = inlined_call_operand.vmem [shape: f32[1,128], index: 4, kind: input, shape index: {}]   ;;  %s3541_s5 = inlined_call_operand.hbm [shape: f32[512,128], index: 5, kind: output, shape index: {0}]   ;;  %s3542_s6 = inlined_call_operand.hbm [shape: f32[2,128], index: 6, kind: output, shape index: {1}]  }
   0x1   :  { %14 = vsyncpa [#allocation3 + $0x1], 0 }
   0x2   :  { %15 = vsyncpa [#allocation6], 0 }
   0x3   :  { %16 = vsyncpa [#allocation4], 0 }
   0x4   :  { %18 = vsyncpa [#allocation4 + $0x1], 0 }
   0x5   :  { %19 = vsyncpa [#allocation10], 0  ;;  %s2935_s21 = smov 0   ;;  %s2937_s22 = smov 0  }
   0x6   :  { %s2939_s23 = smov 0   ;;  %s2941_s24 = smov 0  }
   0x7 LB: > { %s2956_s25 = sadd.s32 4294967295, %s2889_s24   ;;  %s2526_s26 = sadd.s32 4294967294, %s2889_s24   ;;  %s2889_s24 = sphi %s2941_s24, %s3561_s24   ;;  %s2885_s23 = sphi %s2939_s23, %s3560_s23   ;;  %s2881_s22 = sphi %s2937_s22, %s3559_s22   ;;  %s2877_s21 = sphi %s2935_s21, %s3558_s21  }
   0x8   : > { %p45_p0 = scmp.ne.s32.totalorder %s2881_s22, %s2877_s21  ;;  %p46_p1 = scmp.eq.s32.totalorder %s2956_s25, 0 }
   0x9   : > { %p3545_p2 = scmp.eq.s32.totalorder %s2956_s25, 1  ;;  %p159_p3 = scmp.eq.s32.totalorder %s2526_s26, 1 }
   0xa   : > { %p2965_p4 = por %p46_p1, %p45_p0  ;;  %p2527_p5 = scmp.ge.s32.totalorder %s2889_s24, 1 }
   0xb   : > { %p2970_p6 = por %p159_p3, %p45_p0  ;;  %p187_p7 = scmp.lt.s32.totalorder %s2889_s24, 3 }
   0xc   : > { %s198_s7 = sshll.u32 %s3537_s1, 4  ;;  %s2891_s9 = smov [#allocation5]   ;;  %s199_s7 = int_to_ptr.hbm [resolvable:$true] %s198_s7 }
   0xd   : > { %p2979_p9 = pnand %p2527_p5, %p187_p7  ;;  %s200_s10 = sshll.u32 %s2891_s9, 4  ;;  %s201_s10 = int_to_ptr.vmem [resolvable:$true] %s200_s10 }
   0xe   : > { %s215_s13 = sshll.u32 %s3539_s3, 4  ;;  %s3543_s14 = smov 128   ;;  %s216_s13 = int_to_ptr.hbm [resolvable:$true] %s215_s13 }
   0xf   : > { %p2629_p10 = pneg %p2979_p9  ;;  %s3544_s15 = smov 8  }
  0x10   : > { %s2894_s16 = smov [#allocation7]   ;;  %s2998_s18 = sadd.s32 1, %s2889_s24  }
  0x11   : > { %p2630_p11 = pnand %p2629_p10, %p46_p1  ;;  %s217_s17 = sshll.u32 %s2894_s16, 4  ;;  %s218_s17 = int_to_ptr.vmem [resolvable:$true] %s217_s17 }
  0x12   : > { %s32_s19 = sadd.s32 1, %s2885_s23  ;;  %s29_s20 = ssub.s32 %s2889_s24, %s2998_s18 }
  0x13   : > { %2632 = dma.hbm_to_vmem [thread:$0]  (!%p2630_p11), %s199_s7, 6144, %s201_s10, [#allocation6], %s3543_s14, %s3543_s14, %s3544_s15  }
  0x14   : > { %2635 = dma.hbm_to_vmem [thread:$0]  (!%p2630_p11), %s216_s13, 6144, %s218_s17, [#allocation6], %s3543_s14, %s3543_s14, %s3544_s15  }
  0x15   : > { %p39_p13 = scmp.ne.s32.totalorder %s2885_s23, %s2881_s22  ;;  %p30_p0 = scmp.eq.s32.totalorder %s29_s20, 0 }
  0x16   : > { %p40_p3 = scmp.eq.s32.totalorder %s2889_s24, 0  ;;  %p2646_p7 = scmp.lt.s32.totalorder %s2889_s24, 2 }
  0x17   : > { %p3008_p5 = por %p3545_p2, %p39_p13  ;;  %s234_s30 = sand.u32 1, %s2885_s23  }
  0x18   : > { %s3014_s29 = scalar_select %p30_p0, %s2885_s23, %s32_s19  }
  0x19   : > { %p41_p10 = por %p40_p3, %p39_p13  ;;  %s2531_s7 = sshll.u32 %s234_s30, 8 }
  0x1a   : > { %s2579_s9 = sshll.u32 %s2889_s24, 8  ;;  %s238_s13 = scalar_lea.vmem [#allocation2], %s2531_s7 }
  0x1b   : > { %s243_s12 = scalar_lea.hbm %s3536_s0, %s2579_s9  ;;  %s246_s16 = sshll.u32 %s238_s13, 4  ;;  %s247_s16 = int_to_ptr.vmem [resolvable:$true] %s246_s16 }
  0x1c   : > { %s244_s17 = sshll.u32 %s243_s12, 4  ;;  %p3021_p11 = pnand %p2646_p7, %p41_p10  ;;  %s245_s17 = int_to_ptr.hbm [resolvable:$true] %s244_s17 }
  0x1d   : > { %s235_s19 = scalar_lea.sflag [#allocation3], %s234_s30  ;;  %s2757_s14 = sshra.s32 %s245_s17, 4  ;;  %s2758_s14 = int_to_ptr.hbm [resolvable:$true] %s2757_s14 }
  0x1e   : > { %s2759_s15 = scalar_lea.hbm %s2758_s14, 256  ;;  %p2761_p0 = pneg %p3021_p11 }
  0x1f   : > { %p2760_p13 = scmp.ne.s32.totalorder %s2758_s14, %s2759_s15  ;;  %s2764_s10 = scalar_lea.hbm %s3536_s0, 512 }
  0x20   : > { %p2765_p7 = scmp.lt.s32.totalorder %s2758_s14, %s3536_s0  ;;  %p2766_p10 = scmp.lt.s32.totalorder %s2764_s10, %s2759_s15 }
  0x21   : > { %p2762_p3 = pnand %p2761_p0, %p2760_p13 }
  0x22   : > { %p2767_p2 = por %p2766_p10, %p2765_p7 }
  0x23   : > { %p2763_p12 = pneg %p2762_p3 }
  0x25   : > { %p2768_p8 = pnand %p2767_p2, %p2763_p12 }
  0x27   : > { %2771 = shalt.err (!%p2768_p8)
}
  0x28   : > { %s3551_s30 = smov 8   ;;  %s3552_s13 = smov 128  }
  0x29   : > { %2639 = dma.hbm_to_vmem [thread:$0]  (!%p3021_p11), %s245_s17, 4096, %s247_s16, %s235_s19, %s3552_s13, %s3552_s13, %s3551_s30  }
  0x2a   : > { %258 = sbr.rel (%p2979_p9) target bundleno = 770 (0x302), region = 40  ;;  %s3041_s9 = sand.u32 (!%p2979_p9), 1, %s2881_s22  }
  0x2b   : > { %s2535_s14 = sshll.u32 (!%p2979_p9), %s3041_s9, 8  ;;  %s261_s15 = scalar_lea.sflag (!%p2979_p9), [#allocation3], %s3041_s9 }
  0x2c   : > { %s3045_s7 = scalar_lea.vmem (!%p2979_p9), [#allocation2], %s2535_s14 }
  0x2f   : > { %2860 = dma.done.wait (%p2965_p4), %s261_s15, 4096  }
  0x30   : > { %2862 = vsyncadd (%p2965_p4), %s261_s15, 4294963200 }
  0x31   : > { %2864 = dma.done.wait (%p46_p1), [#allocation6], 12288  }
  0x32   : > { %2866 = vsyncadd (%p46_p1), [#allocation6], 4294955008  ;;  %s3055_s8 = scalar_lea.vmem [#allocation8], %s2535_s14  ;;  %p3553_p2 = scmp.ne.s32.totalorder %s2956_s25, 0 }
  0x34   : > { %309 = sbr.rel (%p3553_p2) target bundleno = 59 (0x3b), region = 56 }
  0x39   : > { %v2895_v0 = vmov 0.0  }
  0x3a   : > { %310 = vst [vmem:[#allocation9] sm:$0x3] %v2895_v0 }
  0x3b PF: > { %v375_v1 = vld [vmem:[#allocation5 + $0x78] sm:$0xff]  ;;  %v374_v3 = vld [vmem:[#allocation5 + $0x70] sm:$0xff]  ;;  %v373_v5 = vld [vmem:[#allocation5 + $0x68] sm:$0xff]  ;;  %vm881_vm0 = vcmask 1040384   ;;  %vm1797_vm2 = vcmask 1046528   ;;  %s2580_s11 = sshll.u32 %s2956_s25, 8 }
  0x3c   : > { %v359_v2 = vld [vmem:[#allocation5 + $0xf8] sm:$0xff]  ;;  %2581 = vmatpush.msra.mxu2 %v375_v1  ;;  %v358_v4 = vld [vmem:[#allocation5 + $0xf0] sm:$0xff]  ;;  %v357_v6 = vld [vmem:[#allocation5 + $0xe8] sm:$0xff]  ;;  %376 = vmatpush.msra.mxu0 %v375_v1  ;;  %v2896_v1 = vmov 0.0   ;;  %s2406_s15 = scalar_lea.hbm %s3541_s5, %s2580_s11  ;;  %s2395_s16 = scalar_lea.sflag [#allocation4], %s3041_s9 }
  0x3d   : > { %2597 = vmatpush.msra.mxu3 %v359_v2  ;;  %489 = vmatpush.msra.mxu1 %v359_v2  ;;  %v372_v7 = vld [vmem:[#allocation5 + $0x60] sm:$0xff]  ;;  %v371_v9 = vld [vmem:[#allocation5 + $0x58] sm:$0xff]  ;;  %v370_v11 = vld [vmem:[#allocation5 + $0x50] sm:$0xff]  ;;  %s2409_s27 = sshll.u32 %s2406_s15, 4  ;;  %s2807_s11 = scalar_lea.hbm %s3541_s5, 512  ;;  %s2410_s27 = int_to_ptr.hbm [resolvable:$true] %s2409_s27 }
  0x3e   : > { %2582 = vmatpush.msra.mxu2 %v374_v3  ;;  %v356_v8 = vld [vmem:[#allocation5 + $0xe0] sm:$0xff]  ;;  %377 = vmatpush.msra.mxu0 %v374_v3  ;;  %v355_v10 = vld [vmem:[#allocation5 + $0xd8] sm:$0xff]  ;;  %v354_v12 = vld [vmem:[#allocation5 + $0xd0] sm:$0xff]  ;;  %s2801_s17 = sshra.s32 %s2410_s27, 4  ;;  %s2802_s17 = int_to_ptr.hbm [resolvable:$true] %s2801_s17 }
  0x3f   : > { %2598 = vmatpush.msra.mxu3 %v358_v4  ;;  %490 = vmatpush.msra.mxu1 %v358_v4  ;;  %v369_v13 = vld [vmem:[#allocation5 + $0x48] sm:$0xff]  ;;  %v368_v15 = vld [vmem:[#allocation5 + $0x40] sm:$0xff]  ;;  %v367_v17 = vld [vmem:[#allocation5 + $0x38] sm:$0xff]  ;;  %s2803_s20 = scalar_lea.hbm %s2802_s17, 256  ;;  %p2808_p9 = scmp.lt.s32.totalorder %s2802_s17, %s3541_s5 }
  0x40   : > { %2583 = vmatpush.msra.mxu2 %v373_v5  ;;  %378 = vmatpush.msra.mxu0 %v373_v5  ;;  %v353_v14 = vld [vmem:[#allocation5 + $0xc8] sm:$0xff]  ;;  %v352_v16 = vld [vmem:[#allocation5 + $0xc0] sm:$0xff]  ;;  %v351_v18 = vld [vmem:[#allocation5 + $0xb8] sm:$0xff]  ;;  %p2804_p1 = scmp.ne.s32.totalorder %s2802_s17, %s2803_s20  ;;  %p2809_p12 = scmp.lt.s32.totalorder %s2807_s11, %s2803_s20 }
  0x41   : > { %2599 = vmatpush.msra.mxu3 %v357_v6  ;;  %491 = vmatpush.msra.mxu1 %v357_v6  ;;  %v366_v19 = vld [vmem:[#allocation5 + $0x30] sm:$0xff]  ;;  %v365_v21 = vld [vmem:[#allocation5 + $0x28] sm:$0xff]  ;;  %v364_v23 = vld [vmem:[#allocation5 + $0x20] sm:$0xff] }
  0x42   : > { %2584 = vmatpush.msra.mxu2 %v372_v7  ;;  %379 = vmatpush.msra.mxu0 %v372_v7  ;;  %v350_v20 = vld [vmem:[#allocation5 + $0xb0] sm:$0xff]  ;;  %v349_v22 = vld [vmem:[#allocation5 + $0xa8] sm:$0xff]  ;;  %v348_v24 = vld [vmem:[#allocation5 + $0xa0] sm:$0xff]  ;;  %p2805_p4 = pnand %p2804_p1, %p3008_p5  ;;  %p2810_p11 = por %p2809_p12, %p2808_p9 }
  0x43   : > { %2600 = vmatpush.msra.mxu3 %v356_v8  ;;  %492 = vmatpush.msra.mxu1 %v356_v8  ;;  %v363_v25 = vld [vmem:[#allocation5 + $0x18] sm:$0xff]  ;;  %v362_v27 = vld [vmem:[#allocation5 + $0x10] sm:$0xff]  ;;  %v361_v29 = vld [vmem:[#allocation5 + $0x8] sm:$0xff] }
  0x44   : > { %2585 = vmatpush.msra.mxu2 %v371_v9  ;;  %380 = vmatpush.msra.mxu0 %v371_v9  ;;  %v347_v26 = vld [vmem:[#allocation5 + $0x98] sm:$0xff]  ;;  %v346_v28 = vld [vmem:[#allocation5 + $0x90] sm:$0xff]  ;;  %v345_v30 = vld [vmem:[#allocation5 + $0x88] sm:$0xff]  ;;  %p2806_p8 = pneg %p2805_p4 }
  0x45   : > { %2601 = vmatpush.msra.mxu3 %v355_v10  ;;  %493 = vmatpush.msra.mxu1 %v355_v10  ;;  %v360_v31 = vld [vmem:[#allocation5] sm:$0xff]  ;;  %v3060_v33 = vld [vmem:[%s3045_s7 + $0x70] sm:$0xff]  ;;  %v618_v35 = vld [vmem:[#allocation5 + $0x178] sm:$0xff] }
  0x46   : > { %2586 = vmatpush.msra.mxu2 %v370_v11  ;;  %381 = vmatpush.msra.mxu0 %v370_v11  ;;  %v344_v32 = vld [vmem:[#allocation5 + $0x80] sm:$0xff]  ;;  %v617_v36 = vld [vmem:[#allocation5 + $0x170] sm:$0xff]  ;;  %v616_v37 = vld [vmem:[#allocation5 + $0x168] sm:$0xff]  ;;  %p2811_p13 = pnand %p2810_p11, %p2806_p8 }
  0x47   : > { %2602 = vmatpush.msra.mxu3 %v354_v12  ;;  %494 = vmatpush.msra.mxu1 %v354_v12  ;;  %v3063_v34 = vld [vmem:[%s3045_s7 + $0x80] sm:$0xff]  ;;  %v3068_v39 = vld [vmem:[%s3045_s7 + $0x78] sm:$0xff]  ;;  %v3071_v40 = vld [vmem:[%s3045_s7 + $0x88] sm:$0xff] }
  0x48   : > { %2587 = vmatpush.msra.mxu2 %v369_v13  ;;  %382 = vmatpush.msra.mxu0 %v369_v13  ;;  %v615_v38 = vld [vmem:[#allocation5 + $0x160] sm:$0xff]  ;;  %v614_v41 = vld [vmem:[#allocation5 + $0x158] sm:$0xff]  ;;  %v613_v42 = vld [vmem:[#allocation5 + $0x150] sm:$0xff] }
  0x49   : > { %2603 = vmatpush.msra.mxu3 %v353_v14  ;;  %495 = vmatpush.msra.mxu1 %v353_v14  ;;  %v3076_v43 = vld [vmem:[%s3045_s7 + $0x90] sm:$0xff]  ;;  %v612_v44 = vld [vmem:[#allocation5 + $0x148] sm:$0xff]  ;;  %v3081_v45 = vld [vmem:[%s3045_s7 + $0x98] sm:$0xff] }
  0x4a   : > { %2588 = vmatpush.msra.mxu2 %v368_v15  ;;  %383 = vmatpush.msra.mxu0 %v368_v15  ;;  %v611_v46 = vld [vmem:[#allocation5 + $0x140] sm:$0xff]  ;;  %v610_v48 = vld [vmem:[#allocation5 + $0x138] sm:$0xff]  ;;  %v3091_v49 = vld [vmem:[%s3045_s7 + $0xa8] sm:$0xff] }
  0x4b   : > { %2604 = vmatpush.msra.mxu3 %v352_v16  ;;  %496 = vmatpush.msra.mxu1 %v352_v16  ;;  %v3086_v47 = vld [vmem:[%s3045_s7 + $0xa0] sm:$0xff]  ;;  %v609_v50 = vld [vmem:[#allocation5 + $0x130] sm:$0xff]  ;;  %v608_v52 = vld [vmem:[#allocation5 + $0x128] sm:$0xff] }
  0x4c   : > { %2589 = vmatpush.msra.mxu2 %v367_v17  ;;  %384 = vmatpush.msra.mxu0 %v367_v17  ;;  %v3096_v51 = vld [vmem:[%s3045_s7 + $0xb0] sm:$0xff]  ;;  %v3101_v53 = vld [vmem:[%s3045_s7 + $0xb8] sm:$0xff]  ;;  %v607_v54 = vld [vmem:[#allocation5 + $0x120] sm:$0xff] }
  0x4d   : > { %2605 = vmatpush.msra.mxu3 %v351_v18  ;;  %497 = vmatpush.msra.mxu1 %v351_v18  ;;  %v3106_v55 = vld [vmem:[%s3045_s7 + $0xc0] sm:$0xff]  ;;  %v606_v56 = vld [vmem:[#allocation5 + $0x118] sm:$0xff]  ;;  %v3111_v57 = vld [vmem:[%s3045_s7 + $0xc8] sm:$0xff] }
  0x4e   : > { %2590 = vmatpush.msra.mxu2 %v366_v19  ;;  %385 = vmatpush.msra.mxu0 %v366_v19  ;;  %v605_v58 = vld [vmem:[#allocation5 + $0x110] sm:$0xff]  ;;  %v604_v60 = vld [vmem:[#allocation5 + $0x108] sm:$0xff]  ;;  %v3121_v61 = vld [vmem:[%s3045_s7 + $0xd8] sm:$0xff] }
  0x4f   : > { %2606 = vmatpush.msra.mxu3 %v350_v20  ;;  %498 = vmatpush.msra.mxu1 %v350_v20  ;;  %v3116_v59 = vld [vmem:[%s3045_s7 + $0xd0] sm:$0xff]  ;;  %v603_v62 = vld [vmem:[#allocation5 + $0x100] sm:$0xff]  ;;  %v3133_v2 = vld [vmem:[%s3045_s7 + $0xe8] sm:$0xff] }
  0x50   : > { %2591 = vmatpush.msra.mxu2 %v365_v21  ;;  %386 = vmatpush.msra.mxu0 %v365_v21  ;;  %v3126_v63 = vld [vmem:[%s3045_s7 + $0xe0] sm:$0xff]  ;;  %v312_v3 = vld [vmem:[%s3045_s7 + $0x8] sm:$0xff]  ;;  %v1570_v4 = vld [vmem:[#allocation7 + $0x78] sm:$0xff] }
  0x51   : > { %2607 = vmatpush.msra.mxu3 %v349_v22  ;;  %499 = vmatpush.msra.mxu1 %v349_v22  ;;  %v311_v0 = vld [vmem:[%s3045_s7] sm:$0xff]  ;;  %v3140_v5 = vld [vmem:[%s3045_s7 + $0xf0] sm:$0xff]  ;;  %v848_v7 = vld [vmem:[#allocation7 + $0xf8] sm:$0xff] }
  0x52   : > { %2592 = vmatpush.msra.mxu2 %v364_v23  ;;  %387 = vmatpush.msra.mxu0 %v364_v23  ;;  %v313_v6 = vld [vmem:[%s3045_s7 + $0x10] sm:$0xff]  ;;  %v2070_v9 = vld [vmem:[#allocation7 + $0x178] sm:$0xff]  ;;  %v1568_v13 = vld [vmem:[#allocation7 + $0x68] sm:$0xff] }
  0x53   : > { %2608 = vmatpush.msra.mxu3 %v348_v24  ;;  %500 = vmatpush.msra.mxu1 %v348_v24  ;;  %v1569_v8 = vld [vmem:[#allocation7 + $0x70] sm:$0xff]  ;;  %v3146_v10 = vld [vmem:[%s3045_s7 + $0xf8] sm:$0xff]  ;;  %v315_v16 = vld [vmem:[%s3045_s7 + $0x20] sm:$0xff] }
  0x54   : > { %2593 = vmatpush.msra.mxu2 %v363_v25  ;;  %388 = vmatpush.msra.mxu0 %v363_v25  ;;  %v314_v11 = vld [vmem:[%s3045_s7 + $0x18] sm:$0xff]  ;;  %v847_v12 = vld [vmem:[#allocation7 + $0xf0] sm:$0xff]  ;;  %v846_v17 = vld [vmem:[#allocation7 + $0xe8] sm:$0xff] }
  0x55   : > { %2609 = vmatpush.msra.mxu3 %v347_v26  ;;  %501 = vmatpush.msra.mxu1 %v347_v26  ;;  %v2069_v14 = vld [vmem:[#allocation7 + $0x170] sm:$0xff]  ;;  %v1567_v18 = vld [vmem:[#allocation7 + $0x60] sm:$0xff]  ;;  %v2068_v19 = vld [vmem:[#allocation7 + $0x168] sm:$0xff] }
  0x56   : > { %2594 = vmatpush.msra.mxu2 %v362_v27  ;;  %389 = vmatpush.msra.mxu0 %v362_v27  ;;  %v316_v21 = vld [vmem:[%s3045_s7 + $0x28] sm:$0xff]  ;;  %v845_v22 = vld [vmem:[#allocation7 + $0xe0] sm:$0xff]  ;;  %v1566_v23 = vld [vmem:[#allocation7 + $0x58] sm:$0xff] }
  0x57   : > { %2610 = vmatpush.msra.mxu3 %v346_v28  ;;  %502 = vmatpush.msra.mxu1 %v346_v28  ;;  %v2067_v24 = vld [vmem:[#allocation7 + $0x160] sm:$0xff]  ;;  %v317_v26 = vld [vmem:[%s3045_s7 + $0x30] sm:$0xff]  ;;  %v844_v27 = vld [vmem:[#allocation7 + $0xd8] sm:$0xff] }
  0x58   : > { %2595 = vmatpush.msra.mxu2 %v361_v29  ;;  %390 = vmatpush.msra.mxu0 %v361_v29  ;;  %v1565_v28 = vld [vmem:[#allocation7 + $0x50] sm:$0xff]  ;;  %v2066_v29 = vld [vmem:[#allocation7 + $0x158] sm:$0xff] }
  0x59   : > { %2611 = vmatpush.msra.mxu3 %v345_v30  ;;  %503 = vmatpush.msra.mxu1 %v345_v30 }
  0x5a   : > { %2596 = vmatpush.msra.mxu2 %v360_v31  ;;  %391 = vmatpush.msra.mxu0 %v360_v31  ;;  %v318_v31 = vld [vmem:[%s3045_s7 + $0x38] sm:$0xff] }
  0x5b   : > { %2612 = vmatpush.msra.mxu3 %v344_v32  ;;  %440 = vmatmul.f32.vlgmr.msra.gmra.mxu2 %v3060_v33 }
  0x5c   : > { %553 = vmatmul.f32.vlgmr.msra.gmra.mxu3 %v3063_v34  ;;  %619 = vmatpush.msrb.mxu2 %v618_v35  ;;  %v1564_v35 = vld [vmem:[#allocation7 + $0x48] sm:$0xff] }
  0x5d   : > { %504 = vmatpush.msra.mxu1 %v344_v32  ;;  %392 = vmatmul.f32.vlgmr.msra.gmra.mxu0 %v2896_v1  ;;  %v843_v32 = vld [vmem:[#allocation7 + $0xd0] sm:$0xff] }
  0x5e   : > { %620 = vmatpush.msrb.mxu2 %v617_v36  ;;  %505 = vmatmul.f32.vlgmr.msra.gmra.mxu1 %v311_v0  ;;  %v2065_v36 = vld [vmem:[#allocation7 + $0x150] sm:$0xff] }
  0x5f   : > { %1571 = vmatpush.msrb.mxu3 %v1570_v4  ;;  %1684 = vmatpush.msrb.mxu0 %v848_v7  ;;  %v322_v4 = vld [vmem:[%s3045_s7 + $0x58] sm:$0xff]  ;;  %v1560_v7 = vld [vmem:[#allocation7 + $0x28] sm:$0xff] }
  0x60   : > { %621 = vmatpush.msrb.mxu2 %v616_v37  ;;  %2071 = vmatpush.msrb.mxu1 %v2070_v9 }
  0x61   : > { %1572 = vmatpush.msrb.mxu3 %v1569_v8  ;;  %1685 = vmatpush.msrb.mxu0 %v847_v12  ;;  %v2061_v8 = vld [vmem:[#allocation7 + $0x130] sm:$0xff]  ;;  %v838_v12 = vld [vmem:[#allocation7 + $0xa8] sm:$0xff] }
  0x62   : > { %622 = vmatpush.msrb.mxu2 %v615_v38  ;;  %2072 = vmatpush.msrb.mxu1 %v2069_v14  ;;  %v319_v38 = vld [vmem:[%s3045_s7 + $0x40] sm:$0xff]  ;;  %v2060_v14 = vld [vmem:[#allocation7 + $0x128] sm:$0xff] }
  0x63   : > { %443 = vmatmul.f32.gmra.mxu2 %v3068_v39  ;;  %1573 = vmatpush.msrb.mxu3 %v1568_v13  ;;  %v1559_v13 = vld [vmem:[#allocation7 + $0x20] sm:$0xff] }
  0x64   : > { %556 = vmatmul.f32.gmra.mxu3 %v3071_v40  ;;  %623 = vmatpush.msrb.mxu2 %v614_v41  ;;  %v842_v41 = vld [vmem:[#allocation7 + $0xc8] sm:$0xff] }
  0x65   : > { %395 = vmatmul.f32.gmra.mxu0 %v2896_v1  ;;  %1574 = vmatpush.msrb.mxu3 %v1567_v18  ;;  %v837_v18 = vld [vmem:[#allocation7 + $0xa0] sm:$0xff] }
  0x66   : > { %624 = vmatpush.msrb.mxu2 %v613_v42  ;;  %508 = vmatmul.f32.gmra.mxu1 %v312_v3  ;;  %v1563_v42 = vld [vmem:[#allocation7 + $0x40] sm:$0xff] }
  0x67   : > { %1686 = vmatpush.msrb.mxu0 %v846_v17  ;;  %2073 = vmatpush.msrb.mxu1 %v2068_v19  ;;  %v324_v17 = vld [vmem:[%s3045_s7 + $0x68] sm:$0xff]  ;;  %v1558_v19 = vld [vmem:[#allocation7 + $0x18] sm:$0xff] }
  0x68   : > { %625 = vmatpush.msrb.mxu2 %v612_v44  ;;  %1575 = vmatpush.msrb.mxu3 %v1566_v23  ;;  %v2064_v44 = vld [vmem:[#allocation7 + $0x148] sm:$0xff]  ;;  %v836_v23 = vld [vmem:[#allocation7 + $0x98] sm:$0xff] }
  0x69   : > { %1687 = vmatpush.msrb.mxu0 %v845_v22  ;;  %2074 = vmatpush.msrb.mxu1 %v2067_v24  ;;  %v1557_v24 = vld [vmem:[#allocation7 + $0x10] sm:$0xff] }
  0x6a   : > { %626 = vmatpush.msrb.mxu2 %v611_v46  ;;  %1576 = vmatpush.msrb.mxu3 %v1565_v28  ;;  %v835_v28 = vld [vmem:[#allocation7 + $0x90] sm:$0xff] }
  0x6b   : > { %446 = vmatmul.f32.gmra.mxu2 %v3063_v34  ;;  %1688 = vmatpush.msrb.mxu0 %v844_v27 }
  0x6c   : > { %559 = vmatmul.f32.gmra.mxu3 %v3076_v43  ;;  %627 = vmatpush.msrb.mxu2 %v610_v48  ;;  %v320_v48 = vld [vmem:[%s3045_s7 + $0x48] sm:$0xff] }
  0x6d   : > { %398 = vmatmul.f32.gmra.mxu0 %v311_v0  ;;  %2075 = vmatpush.msrb.mxu1 %v2066_v29  ;;  %v2062_v0 = vld [vmem:[#allocation7 + $0x138] sm:$0xff]  ;;  %v1556_v29 = vld [vmem:[#allocation7 + $0x8] sm:$0xff] }
  0x6e   : > { %628 = vmatpush.msrb.mxu2 %v609_v50  ;;  %511 = vmatmul.f32.gmra.mxu1 %v313_v6  ;;  %v841_v50 = vld [vmem:[#allocation7 + $0xc0] sm:$0xff] }
  0x6f   : > { %1689 = vmatpush.msrb.mxu0 %v843_v32  ;;  %1577 = vmatpush.msrb.mxu3 %v1564_v35 }
  0x70   : > { %629 = vmatpush.msrb.mxu2 %v608_v52  ;;  %2076 = vmatpush.msrb.mxu1 %v2065_v36  ;;  %v1562_v52 = vld [vmem:[#allocation7 + $0x38] sm:$0xff] }
  0x71   : > { %1690 = vmatpush.msrb.mxu0 %v842_v41  ;;  %1578 = vmatpush.msrb.mxu3 %v1563_v42  ;;  %v1555_v41 = vld [vmem:[#allocation7] sm:$0xff]  ;;  %v2056_v42 = vld [vmem:[#allocation7 + $0x108] sm:$0xff] }
  0x72   : > { %630 = vmatpush.msrb.mxu2 %v607_v54  ;;  %2077 = vmatpush.msrb.mxu1 %v2064_v44  ;;  %v2063_v54 = vld [vmem:[#allocation7 + $0x140] sm:$0xff] }
  0x73   : > { %449 = vmatmul.f32.gmra.mxu2 %v3071_v40  ;;  %1691 = vmatpush.msrb.mxu0 %v841_v50  ;;  %v833_v44 = vld [vmem:[#allocation7 + $0x80] sm:$0xff] }
  0x74   : > { %562 = vmatmul.f32.gmra.mxu3 %v3081_v45  ;;  %631 = vmatpush.msrb.mxu2 %v606_v56 }
  0x75   : > { %401 = vmatmul.f32.gmra.mxu0 %v312_v3  ;;  %1579 = vmatpush.msrb.mxu3 %v1562_v52 }
  0x76   : > { %632 = vmatpush.msrb.mxu2 %v605_v58  ;;  %514 = vmatmul.f32.gmra.mxu1 %v314_v11  ;;  %v321_v58 = vld [vmem:[%s3045_s7 + $0x50] sm:$0xff] }
  0x77   : > { %2078 = vmatpush.msrb.mxu1 %v2063_v54  ;;  %v2055_v54 = vld [vmem:[#allocation7 + $0x100] sm:$0xff] }
  0x78   : > { %633 = vmatpush.msrb.mxu2 %v604_v60  ;;  %v840_v60 = vld [vmem:[#allocation7 + $0xb8] sm:$0xff] }
  0x79   : > { %1692 = vmatpush.msrb.mxu0 %v840_v60  ;;  %2079 = vmatpush.msrb.mxu1 %v2062_v0 }
  0x7a   : > { %634 = vmatpush.msrb.mxu2 %v603_v62  ;;  %v1561_v62 = vld [vmem:[#allocation7 + $0x30] sm:$0xff] }
  0x7b   : > { %452 = vmatmul.f32.gmra.mxu2 %v3076_v43  ;;  %1580 = vmatpush.msrb.mxu3 %v1561_v62 }
  0x7c   : > { %565 = vmatmul.f32.gmra.mxu3 %v3086_v47  ;;  %2080 = vmatpush.msrb.mxu1 %v2061_v8 }
  0x7d   : > { %404 = vmatmul.f32.gmra.mxu0 %v313_v6  ;;  %1581 = vmatpush.msrb.mxu3 %v1560_v7 }
  0x7e   : > { %517 = vmatmul.f32.gmra.mxu1 %v315_v16 }
  0x7f   : > { %1582 = vmatpush.msrb.mxu3 %v1559_v13  ;;  %2081 = vmatpush.msrb.mxu1 %v2060_v14 }
  0x81   : > { %1583 = vmatpush.msrb.mxu3 %v1558_v19 }
  0x83   : > { %455 = vmatmul.f32.gmra.mxu2 %v3081_v45  ;;  %1584 = vmatpush.msrb.mxu3 %v1557_v24 }
  0x84   : > { %568 = vmatmul.f32.gmra.mxu3 %v3091_v49 }
  0x85   : > { %407 = vmatmul.f32.gmra.mxu0 %v314_v11  ;;  %1585 = vmatpush.msrb.mxu3 %v1556_v29 }
  0x86   : > { %520 = vmatmul.f32.gmra.mxu1 %v316_v21 }
  0x87   : > { %1586 = vmatpush.msrb.mxu3 %v1555_v41 }
  0x8b   : > { %458 = vmatmul.f32.gmra.mxu2 %v3086_v47 }
  0x8c   : > { %571 = vmatmul.f32.gmra.mxu3 %v3096_v51 }
  0x8d   : > { %410 = vmatmul.f32.gmra.mxu0 %v315_v16 }
  0x8e   : > { %523 = vmatmul.f32.gmra.mxu1 %v317_v26 }
  0x93   : > { %461 = vmatmul.f32.gmra.mxu2 %v3091_v49 }
  0x94   : > { %574 = vmatmul.f32.gmra.mxu3 %v3101_v53 }
  0x95   : > { %413 = vmatmul.f32.gmra.mxu0 %v316_v21 }
  0x96   : > { %526 = vmatmul.f32.gmra.mxu1 %v318_v31 }
  0x9b   : > { %464 = vmatmul.f32.gmra.mxu2 %v3096_v51 }
  0x9c   : > { %577 = vmatmul.f32.gmra.mxu3 %v3106_v55 }
  0x9d   : > { %416 = vmatmul.f32.gmra.mxu0 %v317_v26 }
  0x9e   : > { %529 = vmatmul.f32.gmra.mxu1 %v319_v38 }
  0xa3   : > { %467 = vmatmul.f32.gmra.mxu2 %v3101_v53 }
  0xa4   : > { %580 = vmatmul.f32.gmra.mxu3 %v3111_v57 }
  0xa5   : > { %419 = vmatmul.f32.gmra.mxu0 %v318_v31 }
  0xa6   : > { %532 = vmatmul.f32.gmra.mxu1 %v320_v48 }
  0xab   : > { %470 = vmatmul.f32.gmra.mxu2 %v3106_v55 }
  0xac   : > { %583 = vmatmul.f32.gmra.mxu3 %v3116_v59 }
  0xad   : > { %422 = vmatmul.f32.gmra.mxu0 %v319_v38 }
  0xae   : > { %535 = vmatmul.f32.gmra.mxu1 %v321_v58 }
  0xb3   : > { %473 = vmatmul.f32.gmra.mxu2 %v3111_v57 }
  0xb4   : > { %586 = vmatmul.f32.gmra.mxu3 %v3121_v61 }
  0xb5   : > { %425 = vmatmul.f32.gmra.mxu0 %v320_v48 }
  0xb6   : > { %538 = vmatmul.f32.gmra.mxu1 %v322_v4 }
  0xbb   : > { %476 = vmatmul.f32.gmra.mxu2 %v3116_v59 }
  0xbc   : > { %589 = vmatmul.f32.gmra.mxu3 %v3126_v63 }
  0xbd   : > { %428 = vmatmul.f32.gmra.mxu0 %v321_v58 }
  0xc3   : > { %479 = vmatmul.f32.gmra.mxu2 %v3121_v61 }
  0xc4   : > { %592 = vmatmul.f32.gmra.mxu3 %v3133_v2 }
  0xc5   : > { %431 = vmatmul.f32.gmra.mxu0 %v322_v4 }
  0xcb   : > { %482 = vmatmul.f32.gmra.mxu2 %v3126_v63 }
  0xcc   : > { %595 = vmatmul.f32.gmra.mxu3 %v3140_v5 }
  0xd3   : > { %485 = vmatmul.f32.gmra.mxu2 %v3133_v2 }
  0xd4   : > { %598 = vmatmul.f32.gmra.mxu3 %v3146_v10 }
  0xda   : > { %v393_v32 = vpop.f32.mrf.mxu0 }
  0xdb   : > { %635 = vmatmul.f32.vlgmr.msrb.gmra.mxu2 %v313_v6  ;;  %v839_v6 = vld [vmem:[#allocation7 + $0xb0] sm:$0xff]  ;;  %v506_v35 = vpop.f32.mrf.mxu1 }
  0xdc   : > { %1693 = vmatpush.msrb.mxu0 %v839_v6 }
  0xde   : > { %v3151_v15 = vpop.f32.mrf.mxu2  ;;  %1694 = vmatpush.msrb.mxu0 %v838_v12 }
  0xe0   : > { %1695 = vmatpush.msrb.mxu0 %v837_v18 }
  0xe2   : > { %1696 = vmatpush.msrb.mxu0 %v836_v23 }
  0xe3   : > { %638 = vmatmul.f32.gmra.mxu2 %v314_v11  ;;  %v323_v11 = vld [vmem:[%s3045_s7 + $0x60] sm:$0xff]  ;;  %v509_v50 = vpop.f32.mrf.mxu1  ;;  %s2407_s7 = sshll.u32 %s3055_s8, 4  ;;  %s2408_s7 = int_to_ptr.vmem [resolvable:$true] %s2407_s7 }
  0xe4   : > { %541 = vmatmul.f32.gmra.mxu1 %v323_v11  ;;  %434 = vmatmul.f32.gmra.mxu0 %v323_v11 }
  0xe5   : > { %1697 = vmatpush.msrb.mxu0 %v835_v28 }
  0xe6   : > { %v3154_v20 = vpop.f32.mrf.mxu2 }
  0xeb   : > { %641 = vmatmul.f32.gmra.mxu2 %v315_v16  ;;  %v512_v62 = vpop.f32.mrf.mxu1 }
  0xec   : > { %544 = vmatmul.f32.gmra.mxu1 %v324_v17  ;;  %437 = vmatmul.f32.gmra.mxu0 %v324_v17 }
  0xee   : > { %v3157_v25 = vpop.f32.mrf.mxu2 }
  0xf3   : > { %644 = vmatmul.f32.gmra.mxu2 %v316_v21  ;;  %v2059_v21 = vld [vmem:[#allocation7 + $0x120] sm:$0xff]  ;;  %v515_v7 = vpop.f32.mrf.mxu1 }
  0xf4   : > { %2082 = vmatpush.msrb.mxu1 %v2059_v21 }
  0xf5   : > { %547 = vmatmul.f32.gmra.mxu1 %v3060_v33 }
  0xf6   : > { %v3160_v30 = vpop.f32.mrf.mxu2 }
  0xfb   : > { %647 = vmatmul.f32.gmra.mxu2 %v317_v26  ;;  %v2058_v26 = vld [vmem:[#allocation7 + $0x118] sm:$0xff]  ;;  %v518_v21 = vpop.f32.mrf.mxu1 }
  0xfc   : > { %2083 = vmatpush.msrb.mxu1 %v2058_v26 }
  0xfd   : > { %550 = vmatmul.f32.gmra.mxu1 %v3068_v39 }
  0xfe   : > { %v3163_v37 = vpop.f32.mrf.mxu2 }
 0x103   : > { %650 = vmatmul.f32.gmra.mxu2 %v318_v31  ;;  %v2057_v31 = vld [vmem:[#allocation7 + $0x110] sm:$0xff] }
 0x104   : > { %2084 = vmatpush.msrb.mxu1 %v2057_v31 }
 0x106   : > { %v3166_v46 = vpop.f32.mrf.mxu2  ;;  %2085 = vmatpush.msrb.mxu1 %v2056_v42 }
 0x108   : > { %2086 = vmatpush.msrb.mxu1 %v2055_v54 }
 0x10b   : > { %653 = vmatmul.f32.gmra.mxu2 %v319_v38  ;;  %v834_v38 = vld [vmem:[#allocation7 + $0x88] sm:$0xff] }
 0x10c   : > { %1698 = vmatpush.msrb.mxu0 %v834_v38 }
 0x10e   : > { %v3169_v56 = vpop.f32.mrf.mxu2  ;;  %1699 = vmatpush.msrb.mxu0 %v833_v44 }
 0x113   : > { %656 = vmatmul.f32.gmra.mxu2 %v320_v48  ;;  %v396_v48 = vpop.f32.mrf.mxu0 }
 0x116   : > { %v3172_v3 = vpop.f32.mrf.mxu2 }
 0x11b   : > { %659 = vmatmul.f32.gmra.mxu2 %v321_v58  ;;  %v399_v58 = vpop.f32.mrf.mxu0 }
 0x11e   : > { %v3175_v9 = vpop.f32.mrf.mxu2 }
 0x123   : > { %662 = vmatmul.f32.gmra.mxu2 %v322_v4  ;;  %v402_v6 = vpop.f32.mrf.mxu0 }
 0x126   : > { %v3178_v16 = vpop.f32.mrf.mxu2 }
 0x12b   : > { %665 = vmatmul.f32.gmra.mxu2 %v323_v11  ;;  %v3209_v11 = vld [vmem:[%s3538_s2] ss:$0 sm:$0xff]  ;;  %v405_v19 = vpop.f32.mrf.mxu0 }
 0x12e   : > { %v3181_v22 = vpop.f32.mrf.mxu2 }
 0x133   : > { %668 = vmatmul.f32.gmra.mxu2 %v324_v17  ;;  %v408_v42 = vpop.f32.mrf.mxu0 }
 0x136   : > { %v3184_v27 = vpop.f32.mrf.mxu2 }
 0x13b   : > { %671 = vmatmul.f32.gmra.mxu2 %v3060_v33  ;;  %v3194_v33 = vpop.f32.mrf.mxu3 }
 0x13e   : > { %v3188_v36 = vpop.f32.mrf.mxu2 }
 0x143   : > { %674 = vmatmul.f32.gmra.mxu2 %v3068_v39  ;;  %v978_v39 = vlaneseq  ;;  %v3201_v4 = vpop.f32.mrf.mxu3 }
 0x145   : > { %v3203_v8 = vshrl.u32 %v978_v39, 7 }
 0x146   : > { %v3191_v52 = vpop.f32.mrf.mxu2 }
 0x147   : > { %v1015_v12 = vand.u32 15, %v3203_v8  ;;  %v981_v31 = vadd.s32 16, %v3203_v8 }
 0x149   : > { %v1395_v18 = vadd.s32 4294967295, %v1015_v12  ;;  %v1029_v44 = vand.u32 15, %v981_v31 }
 0x14b   : > { %677 = vmatmul.f32.gmra.mxu2 %v3063_v34  ;;  %v507_v34 = vadd.f32 %v506_v35, %v393_v32  ;;  %v3212_v14 = vpop.f32.mrf.mxu3  ;;  %vm1427_vm1 = vcmp.ge.s32.totalorder %v1395_v18, 0  ;;  %v980_v35 = vadd.s32 8, %v3203_v8  ;;  %v516_v18 = vadd.f32 %v515_v7, %v402_v6 }
 0x14c   : > { %v983_v6 = vadd.s32 32, %v3203_v8  ;;  %v982_v7 = vadd.s32 24, %v3203_v8 }
 0x14e   : > { %v3196_v60 = vpop.f32.mrf.mxu2 }
 0x153   : > { %680 = vmatmul.f32.gmra.mxu2 %v3071_v40  ;;  %v3220_v38 = vpop.f32.mrf.mxu3 }
 0x156   : > { %v3199_v0 = vpop.f32.mrf.mxu2 }
 0x15b   : > { %683 = vmatmul.f32.gmra.mxu2 %v3076_v43  ;;  %v510_v43 = vadd.f32 %v509_v50, %v396_v48  ;;  %v521_v48 = vpop.f32.mrf.mxu1 }
 0x15e   : > { %v636_v40 = vpop.f32.mrf.mxu2 }
 0x15f   : > { %v732_v13 = vadd.f32 %v636_v40, %v507_v34  ;;  %v1022_v34 = vand.u32 15, %v980_v35 }
 0x161   : > { %v768_v17 = vadd.f32 %v3209_v11, %v732_v13 }
 0x163   : > { %686 = vmatmul.f32.gmra.mxu2 %v3081_v45  ;;  %v800_v23 = vmax.f32 %v768_v17, 0.0  ;;  %v513_v45 = vadd.f32 %v512_v62, %v399_v58  ;;  %v1397_v58 = vadd.s32 4294967295, %v1029_v44  ;;  %v1895_v62 = vadd.s32 1, %v1022_v34  ;;  %v524_v31 = vpop.f32.mrf.mxu1 }
 0x165   : > { %1700 = vmatmul.f32.vlgmr.msrb.gmra.mxu0 %v800_v23  ;;  %v882_v24 = vrot.slane %v800_v23, 7  ;;  %v1798_v54 = vrot.slane %v800_v23, 1  ;;  %vm1429_vm3 = vcmp.ge.s32.totalorder %v1397_v58, 0  ;;  %vm1959_vm4 = vcmp.lt.s32.totalorder %v1895_v62, 16 }
 0x166   : > { %v639_v26 = vpop.f32.mrf.mxu2 }
 0x167   : > { %v733_v28 = vadd.f32 %v639_v26, %v510_v43  ;;  %v977_v29 = vsel %vm881_vm0, 0.0, %v882_v24  ;;  %v3227_v26 = vpop.f32.mrf.mxu3 }
 0x168   : > { %2540 = vmatmul.msk.f32.vlgmr.msrb.gmra.mxu3 %vm1427_vm1, %v977_v29 }
 0x169   : > { %v769_v32 = vadd.f32 %v3209_v11, %v733_v28 }
 0x16b   : > { %689 = vmatmul.f32.gmra.mxu2 %v3086_v47  ;;  %v801_v41 = vmax.f32 %v769_v32, 0.0  ;;  %v527_v62 = vpop.f32.mrf.mxu1 }
 0x16d   : > { %1703 = vmatmul.f32.gmra.mxu0 %v801_v41  ;;  %v883_v50 = vrot.slane %v801_v41, 7  ;;  %v1799_v39 = vrot.slane %v801_v41, 1  ;;  %v519_v41 = vadd.f32 %v518_v21, %v405_v19 }
 0x16e   : > { %v642_v12 = vpop.f32.mrf.mxu2 }
 0x16f   : > { %v734_v40 = vadd.f32 %v642_v12, %v513_v45  ;;  %v884_v13 = vsel %vm881_vm0, %v882_v24, %v883_v50  ;;  %v1800_v17 = vsel %vm1797_vm2, %v1798_v54, %v1799_v39  ;;  %v411_v24 = vpop.f32.mrf.mxu0  ;;  %v1043_v12 = vand.u32 15, %v983_v6 }
 0x170   : > { %1590 = vmatmul.f32.gmra.mxu3 %v884_v13  ;;  %2087 = vmatmul.f32.vlgmr.msrb.gmra.mxu1 %v1800_v17  ;;  %v3235_v13 = vpop.f32.mrf.mxu3 }
 0x171   : > { %v770_v47 = vadd.f32 %v3209_v11, %v734_v40  ;;  %v1036_v40 = vand.u32 15, %v982_v7  ;;  %v1399_v19 = vadd.s32 4294967295, %v1043_v12 }
 0x173   : > { %692 = vmatmul.f32.gmra.mxu2 %v3091_v49  ;;  %v802_v43 = vmax.f32 %v770_v47, 0.0  ;;  %v1897_v21 = vadd.s32 1, %v1036_v40  ;;  %vm1431_vm5 = vcmp.ge.s32.totalorder %v1399_v19, 0  ;;  %v530_v7 = vpop.f32.mrf.mxu1 }
 0x175   : > { %1706 = vmatmul.f32.gmra.mxu0 %v802_v43  ;;  %v885_v23 = vrot.slane %v802_v43, 7  ;;  %v1801_v28 = vrot.slane %v802_v43, 1  ;;  %vm1961_vm6 = vcmp.lt.s32.totalorder %v1897_v21, 16 }
 0x176   : > { %v645_v29 = vpop.f32.mrf.mxu2 }
 0x177   : > { %v735_v32 = vadd.f32 %v645_v29, %v516_v18  ;;  %v886_v35 = vsel %vm881_vm0, %v883_v50, %v885_v23  ;;  %v1802_v45 = vsel %vm1797_vm2, %v1799_v39, %v1801_v28  ;;  %v414_v58 = vpop.f32.mrf.mxu0  ;;  %v522_v18 = vadd.f32 %v521_v48, %v408_v42 }
 0x178   : > { %2541 = vmatmul.msk.f32.gmra.mxu3 %vm1429_vm3, %v886_v35  ;;  %2556 = vmatmul.msk.f32.gmra.mxu1 %vm1959_vm4, %v1802_v45  ;;  %v984_v42 = vadd.s32 40, %v3203_v8 }
 0x179   : > { %v771_v49 = vadd.f32 %v3209_v11, %v735_v32 }
 0x17a   : > { %v1050_v40 = vand.u32 15, %v984_v42 }
 0x17b   : > { %695 = vmatmul.f32.gmra.mxu2 %v3096_v51  ;;  %v803_v44 = vmax.f32 %v771_v49, 0.0  ;;  %v3243_v49 = vpop.f32.mrf.mxu3 }
 0x17c   : > { %v1899_v21 = vadd.s32 1, %v1050_v40 }
 0x17d   : > { %1709 = vmatmul.f32.gmra.mxu0 %v803_v44  ;;  %v887_v54 = vrot.slane %v803_v44, 7  ;;  %v1803_v34 = vrot.slane %v803_v44, 1 }
 0x17e   : > { %v648_v50 = vpop.f32.mrf.mxu2  ;;  %vm1963_vm8 = vcmp.lt.s32.totalorder %v1899_v21, 16 }
 0x17f   : > { %v736_v39 = vadd.f32 %v648_v50, %v519_v41  ;;  %v888_v17 = vsel %vm881_vm0, %v885_v23, %v887_v54  ;;  %v1804_v47 = vsel %vm1797_vm2, %v1801_v28, %v1803_v34  ;;  %v417_v48 = vpop.f32.mrf.mxu0  ;;  %v525_v41 = vadd.f32 %v524_v31, %v411_v24 }
 0x180   : > { %1596 = vmatmul.f32.gmra.mxu3 %v888_v17  ;;  %2093 = vmatmul.f32.gmra.mxu1 %v1804_v47  ;;  %v528_v24 = vadd.f32 %v527_v62, %v414_v58  ;;  %v986_v58 = vadd.s32 56, %v3203_v8  ;;  %v531_v62 = vadd.f32 %v530_v7, %v417_v48 }
 0x181   : > { %v772_v51 = vadd.f32 %v3209_v11, %v736_v39 }
 0x183   : > { %698 = vmatmul.f32.gmra.mxu2 %v3101_v53  ;;  %v804_v43 = vmax.f32 %v772_v51, 0.0  ;;  %v985_v53 = vadd.s32 48, %v3203_v8 }
 0x185   : > { %1712 = vmatmul.f32.gmra.mxu0 %v804_v43  ;;  %v889_v29 = vrot.slane %v804_v43, 7  ;;  %v1805_v32 = vrot.slane %v804_v43, 1  ;;  %v533_v43 = vpop.f32.mrf.mxu1 }
 0x186   : > { %v651_v23 = vpop.f32.mrf.mxu2 }
 0x187   : > { %v737_v35 = vadd.f32 %v651_v23, %v522_v18  ;;  %v890_v28 = vsel %vm881_vm0, %v887_v54, %v889_v29  ;;  %v1806_v45 = vsel %vm1797_vm2, %v1803_v34, %v1805_v32  ;;  %v1057_v34 = vand.u32 15, %v985_v53  ;;  %v420_v18 = vpop.f32.mrf.mxu0 }
 0x188   : > { %2542 = vmatmul.msk.f32.gmra.mxu3 %vm1431_vm5, %v890_v28  ;;  %2557 = vmatmul.msk.f32.gmra.mxu1 %vm1961_vm6, %v1806_v45 }
 0x189   : > { %v773_v6 = vadd.f32 %v3209_v11, %v737_v35  ;;  %v1401_v19 = vadd.s32 4294967295, %v1057_v34  ;;  %v1064_v34 = vand.u32 15, %v986_v58 }
 0x18b   : > { %701 = vmatmul.f32.gmra.mxu2 %v3106_v55  ;;  %v805_v44 = vmax.f32 %v773_v6, 0.0  ;;  %v3252_v55 = vpop.f32.mrf.mxu3  ;;  %vm1433_vm7 = vcmp.ge.s32.totalorder %v1401_v19, 0  ;;  %v1901_v7 = vadd.s32 1, %v1064_v34  ;;  %v534_v19 = vadd.f32 %v533_v43, %v420_v18 }
 0x18c   : > { %v989_v18 = vadd.s32 80, %v3203_v8  ;;  %v988_v43 = vadd.s32 72, %v3203_v8 }
 0x18d   : > { %1715 = vmatmul.f32.gmra.mxu0 %v805_v44  ;;  %v891_v54 = vrot.slane %v805_v44, 7  ;;  %v1807_v12 = vrot.slane %v805_v44, 1  ;;  %vm1965_vm10 = vcmp.lt.s32.totalorder %v1901_v7, 16 }
 0x18e   : > { %v654_v50 = vpop.f32.mrf.mxu2 }
 0x18f   : > { %v738_v39 = vadd.f32 %v654_v50, %v525_v41  ;;  %v892_v17 = vsel %vm881_vm0, %v889_v29, %v891_v54  ;;  %v1808_v47 = vsel %vm1797_vm2, %v1805_v32, %v1807_v12  ;;  %v536_v50 = vpop.f32.mrf.mxu1 }
 0x190   : > { %1602 = vmatmul.f32.gmra.mxu3 %v892_v17  ;;  %2099 = vmatmul.f32.gmra.mxu1 %v1808_v47 }
 0x191   : > { %v774_v51 = vadd.f32 %v3209_v11, %v738_v39 }
 0x193   : > { %704 = vmatmul.f32.gmra.mxu2 %v3111_v57  ;;  %v806_v31 = vmax.f32 %v774_v51, 0.0  ;;  %v987_v57 = vadd.s32 64, %v3203_v8  ;;  %v3261_v42 = vpop.f32.mrf.mxu3 }
 0x195   : > { %1718 = vmatmul.f32.gmra.mxu0 %v806_v31  ;;  %v893_v23 = vrot.slane %v806_v31, 7  ;;  %v1809_v29 = vrot.slane %v806_v31, 1 }
 0x196   : > { %v657_v32 = vpop.f32.mrf.mxu2 }
 0x197   : > { %v739_v35 = vadd.f32 %v657_v32, %v528_v24  ;;  %v894_v28 = vsel %vm881_vm0, %v891_v54, %v893_v23  ;;  %v1810_v45 = vsel %vm1797_vm2, %v1807_v12, %v1809_v29  ;;  %v1071_v54 = vand.u32 15, %v987_v57  ;;  %v423_v12 = vpop.f32.mrf.mxu0 }
 0x198   : > { %2543 = vmatmul.msk.f32.gmra.mxu3 %vm1433_vm7, %v894_v28  ;;  %2558 = vmatmul.msk.f32.gmra.mxu1 %vm1963_vm8, %v1810_v45  ;;  %v539_v45 = vpop.f32.mrf.mxu1  ;;  %v537_v57 = vadd.f32 %v536_v50, %v423_v12 }
 0x199   : > { %v775_v6 = vadd.f32 %v3209_v11, %v739_v35  ;;  %v1403_v48 = vadd.s32 4294967295, %v1071_v54 }
 0x19b   : > { %707 = vmatmul.f32.gmra.mxu2 %v3116_v59  ;;  %v807_v53 = vmax.f32 %v775_v6, 0.0  ;;  %vm1435_vm9 = vcmp.ge.s32.totalorder %v1403_v48, 0  ;;  %v3267_v32 = vpop.f32.mrf.mxu3 }
 0x19d   : > { %1721 = vmatmul.f32.gmra.mxu0 %v807_v53  ;;  %v895_v41 = vrot.slane %v807_v53, 7  ;;  %v1811_v44 = vrot.slane %v807_v53, 1  ;;  %v1085_v53 = vand.u32 15, %v989_v18 }
 0x19e   : > { %v660_v40 = vpop.f32.mrf.mxu2 }
 0x19f   : > { %v740_v39 = vadd.f32 %v660_v40, %v531_v62  ;;  %v896_v17 = vsel %vm881_vm0, %v893_v23, %v895_v41  ;;  %v1812_v47 = vsel %vm1797_vm2, %v1809_v29, %v1811_v44  ;;  %v426_v28 = vpop.f32.mrf.mxu0 }
 0x1a0   : > { %1608 = vmatmul.f32.gmra.mxu3 %v896_v17  ;;  %2105 = vmatmul.f32.gmra.mxu1 %v1812_v47  ;;  %v1405_v47 = vadd.s32 4294967295, %v1085_v53  ;;  %v542_v50 = vpop.f32.mrf.mxu1  ;;  %v540_v48 = vadd.f32 %v539_v45, %v426_v28 }
 0x1a1   : > { %v776_v59 = vadd.f32 %v3209_v11, %v740_v39 }
 0x1a2   : > { %vm1437_vm11 = vcmp.ge.s32.totalorder %v1405_v47, 0 }
 0x1a3   : > { %v808_v51 = vmax.f32 %v776_v59, 0.0  ;;  %710 = vmatmul.f32.gmra.mxu2 %v3121_v61  ;;  %v3277_v39 = vpop.f32.mrf.mxu3 }
 0x1a5   : > { %v897_v21 = vrot.slane %v808_v51, 7  ;;  %1724 = vmatmul.f32.gmra.mxu0 %v808_v51  ;;  %v1813_v24 = vrot.slane %v808_v51, 1 }
 0x1a6   : > { %v663_v31 = vpop.f32.mrf.mxu2 }
 0x1a7   : > { %v741_v23 = vadd.f32 %v663_v31, %v534_v19  ;;  %v898_v29 = vsel %vm881_vm0, %v895_v41, %v897_v21  ;;  %v1814_v35 = vsel %vm1797_vm2, %v1811_v44, %v1813_v24  ;;  %v1078_v41 = vand.u32 15, %v988_v43  ;;  %v429_v12 = vpop.f32.mrf.mxu0 }
 0x1a8   : > { %2544 = vmatmul.msk.f32.gmra.mxu3 %vm1435_vm9, %v898_v29  ;;  %2559 = vmatmul.msk.f32.gmra.mxu1 %vm1965_vm10, %v1814_v35  ;;  %v991_v29 = vadd.s32 96, %v3203_v8  ;;  %v543_v45 = vadd.f32 %v542_v50, %v429_v12  ;;  %v545_v18 = vpop.f32.mrf.mxu1 }
 0x1a9   : > { %v777_v61 = vadd.f32 %v3209_v11, %v741_v23 }
 0x1ab   : > { %v809_v6 = vmax.f32 %v777_v61, 0.0  ;;  %713 = vmatmul.f32.gmra.mxu2 %v3126_v63  ;;  %v1903_v63 = vadd.s32 1, %v1078_v41  ;;  %v3286_v35 = vpop.f32.mrf.mxu3 }
 0x1ad   : > { %1727 = vmatmul.f32.gmra.mxu0 %v809_v6  ;;  %v899_v58 = vrot.slane %v809_v6, 7  ;;  %v1815_v62 = vrot.slane %v809_v6, 1  ;;  %vm1967_vm12 = vcmp.lt.s32.totalorder %v1903_v63, 16 }
 0x1ae   : > { %v666_v44 = vpop.f32.mrf.mxu2 }
 0x1af   : > { %v742_v54 = vadd.f32 %v666_v44, %v537_v57  ;;  %v900_v34 = vsel %vm881_vm0, %v897_v21, %v899_v58  ;;  %v1816_v40 = vsel %vm1797_vm2, %v1813_v24, %v1815_v62  ;;  %v432_v61 = vpop.f32.mrf.mxu0  ;;  %v1099_v57 = vand.u32 15, %v991_v29 }
 0x1b0   : > { %1614 = vmatmul.f32.gmra.mxu3 %v900_v34  ;;  %2111 = vmatmul.f32.gmra.mxu1 %v1816_v40 }
 0x1b1   : > { %v778_v17 = vadd.f32 %v3209_v11, %v742_v54  ;;  %v1407_v34 = vadd.s32 4294967295, %v1099_v57 }
 0x1b3   : > { %v810_v59 = vmax.f32 %v778_v17, 0.0  ;;  %716 = vmatmul.f32.gmra.mxu2 %v3133_v2  ;;  %v990_v2 = vadd.s32 88, %v3203_v8  ;;  %v546_v17 = vadd.f32 %v545_v18, %v432_v61  ;;  %v3293_v47 = vpop.f32.mrf.mxu3  ;;  %vm1439_vm13 = vcmp.ge.s32.totalorder %v1407_v34, 0 }
 0x1b5   : > { %v901_v7 = vrot.slane %v810_v59, 7  ;;  %v1817_v51 = vrot.slane %v810_v59, 1  ;;  %1730 = vmatmul.f32.gmra.mxu0 %v810_v59 }
 0x1b6   : > { %v669_v19 = vpop.f32.mrf.mxu2 }
 0x1b7   : > { %v743_v21 = vadd.f32 %v669_v19, %v540_v48  ;;  %v902_v24 = vsel %vm881_vm0, %v899_v58, %v901_v7  ;;  %v1818_v31 = vsel %vm1797_vm2, %v1815_v62, %v1817_v51  ;;  %v1092_v58 = vand.u32 15, %v990_v2  ;;  %v435_v50 = vpop.f32.mrf.mxu0  ;;  %v548_v48 = vpop.f32.mrf.mxu1 }
 0x1b8   : > { %2545 = vmatmul.msk.f32.gmra.mxu3 %vm1437_vm11, %v902_v24  ;;  %2560 = vmatmul.msk.f32.gmra.mxu1 %vm1967_vm12, %v1818_v31  ;;  %v992_v24 = vadd.s32 104, %v3203_v8 }
 0x1b9   : > { %v779_v23 = vadd.f32 %v3209_v11, %v743_v21  ;;  %v993_v21 = vadd.s32 112, %v3203_v8 }
 0x1bb   : > { %v811_v28 = vmax.f32 %v779_v23, 0.0  ;;  %719 = vmatmul.f32.gmra.mxu2 %v3140_v5  ;;  %v1905_v5 = vadd.s32 1, %v1092_v58  ;;  %v549_v23 = vadd.f32 %v548_v48, %v435_v50  ;;  %v3301_v18 = vpop.f32.mrf.mxu3 }
 0x1bd   : > { %1733 = vmatmul.f32.gmra.mxu0 %v811_v28  ;;  %v903_v43 = vrot.slane %v811_v28, 7  ;;  %v1819_v6 = vrot.slane %v811_v28, 1  ;;  %vm1969_vm14 = vcmp.lt.s32.totalorder %v1905_v5, 16  ;;  %v1113_v28 = vand.u32 15, %v993_v21 }
 0x1be   : > { %v672_v62 = vpop.f32.mrf.mxu2 }
 0x1bf   : > { %v744_v53 = vadd.f32 %v672_v62, %v543_v45  ;;  %v904_v41 = vsel %vm881_vm0, %v901_v7, %v903_v43  ;;  %v1820_v44 = vsel %vm1797_vm2, %v1817_v51, %v1819_v6  ;;  %v1106_v45 = vand.u32 15, %v992_v24  ;;  %v438_v58 = vpop.f32.mrf.mxu0  ;;  %v551_v62 = vpop.f32.mrf.mxu1 }
 0x1c0   : > { %1620 = vmatmul.f32.gmra.mxu3 %v904_v41  ;;  %2117 = vmatmul.f32.gmra.mxu1 %v1820_v44  ;;  %v1409_v41 = vadd.s32 4294967295, %v1113_v28  ;;  %v552_v34 = vadd.f32 %v551_v62, %v438_v58 }
 0x1c1   : > { %v780_v54 = vadd.f32 %v3209_v11, %v744_v53  ;;  %v1907_v44 = vadd.s32 1, %v1106_v45 }
 0x1c2   : > { %vm1441_vm15 = vcmp.ge.s32.totalorder %v1409_v41, 0 }
 0x1c3   : > { %v812_v40 = vmax.f32 %v780_v54, 0.0  ;;  %722 = vmatmul.f32.gmra.mxu2 %v3146_v10  ;;  %vm1971_vm1 = vcmp.lt.s32.totalorder %v1907_v44, 16 }
 0x1c5   : > { %v905_v63 = vrot.slane %v812_v40, 7  ;;  %v1821_v12 = vrot.slane %v812_v40, 1  ;;  %1736 = vmatmul.f32.gmra.mxu0 %v812_v40 }
 0x1c6   : > { %v675_v59 = vpop.f32.mrf.mxu2 }
 0x1c7   : > { %v745_v7 = vadd.f32 %v675_v59, %v546_v17  ;;  %v906_v51 = vsel %vm881_vm0, %v903_v43, %v905_v63  ;;  %v1822_v19 = vsel %vm1797_vm2, %v1819_v6, %v1821_v12  ;;  %v3309_v59 = vpop.f32.mrf.mxu3 }
 0x1c8   : > { %2546 = vmatmul.msk.f32.gmra.mxu3 %vm1439_vm13, %v906_v51  ;;  %2561 = vmatmul.msk.f32.gmra.mxu1 %vm1969_vm14, %v1822_v19  ;;  %v555_v19 = vadd.f32 %v3194_v33, %v3151_v15  ;;  %v558_v33 = vadd.f32 %v3201_v4, %v3154_v20 }
 0x1c9   : > { %v781_v10 = vadd.f32 %v3209_v11, %v745_v7  ;;  %v994_v7 = vadd.s32 120, %v3203_v8 }
 0x1cb   : > { %v813_v31 = vmax.f32 %v781_v10, 0.0  ;;  %725 = vmatmul.f32.gmra.mxu2 %v2896_v1 }
 0x1cd   : > { %1739 = vmatmul.f32.gmra.mxu0 %v813_v31  ;;  %v907_v29 = vrot.slane %v813_v31, 7  ;;  %v1823_v2 = vrot.slane %v813_v31, 1  ;;  %v1120_v31 = vand.u32 15, %v994_v7 }
 0x1ce   : > { %v678_v61 = vpop.f32.mrf.mxu2 }
 0x1cf   : > { %v746_v43 = vadd.f32 %v678_v61, %v549_v23  ;;  %v908_v6 = vsel %vm881_vm0, %v905_v63, %v907_v29  ;;  %v1824_v57 = vsel %vm1797_vm2, %v1821_v12, %v1823_v2 }
 0x1d0   : > { %1626 = vmatmul.f32.gmra.mxu3 %v908_v6  ;;  %2123 = vmatmul.f32.gmra.mxu1 %v1824_v57  ;;  %v3319_v57 = vpop.f32.mrf.mxu3 }
 0x1d1   : > { %v782_v53 = vadd.f32 %v3209_v11, %v746_v43  ;;  %v1909_v43 = vadd.s32 1, %v1120_v31 }
 0x1d3   : > { %v814_v54 = vmax.f32 %v782_v53, 0.0  ;;  %728 = vmatmul.f32.gmra.mxu2 %v2896_v1  ;;  %v995_v1 = vadd.s32 128, %v3203_v8  ;;  %vm1973_vm4 = vcmp.lt.s32.totalorder %v1909_v43, 16  ;;  %v564_v43 = vadd.f32 %v3220_v38, %v3160_v30 }
 0x1d4   : > { %v999_v38 = vadd.s32 160, %v3203_v8 }
 0x1d5   : > { %v909_v5 = vrot.slane %v814_v54, 7  ;;  %v1825_v40 = vrot.slane %v814_v54, 1  ;;  %1742 = vmatmul.f32.gmra.mxu0 %v814_v54  ;;  %v1127_v24 = vand.u32 15, %v995_v1 }
 0x1d6   : > { %v681_v17 = vpop.f32.mrf.mxu2 }
 0x1d7   : > { %v747_v63 = vadd.f32 %v681_v17, %v552_v34  ;;  %v910_v12 = vsel %vm881_vm0, %v907_v29, %v909_v5  ;;  %v1826_v50 = vsel %vm1797_vm2, %v1823_v2, %v1825_v40  ;;  %v1411_v61 = vadd.s32 4294967295, %v1127_v24 }
 0x1d8   : > { %2547 = vmatmul.msk.f32.gmra.mxu3 %vm1441_vm15, %v910_v12  ;;  %2562 = vmatmul.msk.f32.gmra.mxu1 %vm1971_vm1, %v1826_v50  ;;  %v3333_v50 = vld [vmem:[%s3540_s4] ss:$0 sm:$0xff] }
 0x1d9   : > { %v783_v48 = vadd.f32 %v3209_v11, %v747_v63  ;;  %vm1443_vm3 = vcmp.ge.s32.totalorder %v1411_v61, 0  ;;  %v561_v63 = vadd.f32 %v3212_v14, %v3157_v25 }
 0x1db   : > { %v815_v51 = vmax.f32 %v783_v48, 0.0 }
 0x1dd   : > { %1745 = vmatmul.f32.gmra.mxu0 %v815_v51  ;;  %v911_v10 = vrot.slane %v815_v51, 7  ;;  %v1827_v21 = vrot.slane %v815_v51, 1 }
 0x1de   : > { %v684_v23 = vpop.f32.mrf.mxu2 }
 0x1df   : > { %v748_v29 = vadd.f32 %v684_v23, %v555_v19  ;;  %v912_v2 = vsel %vm881_vm0, %v909_v5, %v911_v10  ;;  %v1828_v28 = vsel %vm1797_vm2, %v1825_v40, %v1827_v21  ;;  %v997_v5 = vadd.s32 144, %v3203_v8 }
 0x1e0   : > { %1632 = vmatmul.f32.gmra.mxu3 %v912_v2  ;;  %2129 = vmatmul.f32.gmra.mxu1 %v1828_v28  ;;  %v996_v40 = vadd.s32 136, %v3203_v8 }
 0x1e1   : > { %v784_v45 = vadd.f32 %v3209_v11, %v748_v29  ;;  %v1141_v51 = vand.u32 15, %v997_v5  ;;  %v998_v5 = vadd.s32 152, %v3203_v8 }
 0x1e2   : > { %v1701_v6 = vpop.f32.mrf.mxu0  ;;  %v1134_v19 = vand.u32 15, %v996_v40 }
 0x1e3   : > { %v816_v15 = vmax.f32 %v784_v45, 0.0  ;;  %v1413_v29 = vadd.s32 4294967295, %v1141_v51 }
 0x1e4   : > { %v1911_v2 = vadd.s32 1, %v1134_v19 }
 0x1e5   : > { %v913_v58 = vrot.slane %v816_v15, 7  ;;  %v1829_v62 = vrot.slane %v816_v15, 1  ;;  %1748 = vmatmul.f32.gmra.mxu0 %v816_v15  ;;  %vm1445_vm5 = vcmp.ge.s32.totalorder %v1413_v29, 0 }
 0x1e6   : > { %v687_v53 = vpop.f32.mrf.mxu2  ;;  %vm1975_vm6 = vcmp.lt.s32.totalorder %v1911_v2, 16 }
 0x1e7   : > { %v749_v41 = vadd.f32 %v687_v53, %v558_v33  ;;  %v914_v44 = vsel %vm881_vm0, %v911_v10, %v913_v58  ;;  %v1830_v54 = vsel %vm1797_vm2, %v1827_v21, %v1829_v62 }
 0x1e8   : > { %2548 = vmatmul.msk.f32.gmra.mxu3 %vm1443_vm3, %v914_v44  ;;  %2563 = vmatmul.msk.f32.gmra.mxu1 %vm1973_vm4, %v1830_v54 }
 0x1e9   : > { %v785_v34 = vadd.f32 %v3209_v11, %v749_v41 }
 0x1ea   : > { %v1704_v20 = vpop.f32.mrf.mxu0 }
 0x1eb   : > { %v817_v4 = vmax.f32 %v785_v34, 0.0  ;;  %v1588_v17 = vpop.f32.mrf.mxu3 }
 0x1ec   : > { %v1702_v12 = vadd.f32 %v1701_v6, %v1588_v17 }
 0x1ed   : > { %1751 = vmatmul.f32.gmra.mxu0 %v817_v4  ;;  %v2088_v48 = vpop.f32.mrf.mxu1  ;;  %v915_v1 = vrot.slane %v817_v4, 7  ;;  %v1831_v7 = vrot.slane %v817_v4, 1 }
 0x1ee   : > { %v2184_v10 = vadd.f32 %v2088_v48, %v1702_v12  ;;  %v690_v21 = vpop.f32.mrf.mxu2  ;;  %v567_v48 = vadd.f32 %v3227_v26, %v3163_v37 }
 0x1ef   : > { %v750_v24 = vadd.f32 %v690_v21, %v561_v63  ;;  %v916_v31 = vsel %vm881_vm0, %v913_v58, %v915_v1  ;;  %v1832_v25 = vsel %vm1797_vm2, %v1829_v62, %v1831_v7  ;;  %v1155_v21 = vand.u32 15, %v999_v38 }
 0x1f0   : > { %v2220_v14 = vadd.f32 %v3333_v50, %v2184_v10  ;;  %1638 = vmatmul.f32.gmra.mxu3 %v916_v31  ;;  %2135 = vmatmul.f32.gmra.mxu1 %v1832_v25 }
 0x1f1   : > { %v786_v23 = vadd.f32 %v3209_v11, %v750_v24  ;;  %v1148_v24 = vand.u32 15, %v998_v5  ;;  %v1415_v26 = vadd.s32 4294967295, %v1155_v21 }
 0x1f2   : > { %2252 = vst [vmem:[%s3055_s8] sm:$0xff] %v2220_v14  ;;  %v1707_v28 = vpop.f32.mrf.mxu0  ;;  %v2322_v40 = vmul.f32 %v2220_v14, %v2220_v14 }
 0x1f3   : > { %v818_v45 = vmax.f32 %v786_v23, 0.0  ;;  %v1591_v61 = vpop.f32.mrf.mxu3  ;;  %vm1447_vm7 = vcmp.ge.s32.totalorder %v1415_v26, 0 }
 0x1f4   : > { %v1705_v6 = vadd.f32 %v1704_v20, %v1591_v61 }
 0x1f5   : > { %v917_v15 = vrot.slane %v818_v45, 7  ;;  %v1833_v33 = vrot.slane %v818_v45, 1  ;;  %1754 = vmatmul.f32.gmra.mxu0 %v818_v45  ;;  %v2091_v58 = vpop.f32.mrf.mxu1 }
 0x1f6   : > { %v2185_v62 = vadd.f32 %v2091_v58, %v1705_v6  ;;  %v693_v53 = vpop.f32.mrf.mxu2 }
 0x1f7   : > { %v751_v41 = vadd.f32 %v693_v53, %v564_v43  ;;  %v918_v44 = vsel %vm881_vm0, %v915_v1, %v917_v15  ;;  %v1834_v54 = vsel %vm1797_vm2, %v1831_v7, %v1833_v33 }
 0x1f8   : > { %v2221_v34 = vadd.f32 %v3333_v50, %v2185_v62  ;;  %2549 = vmatmul.msk.f32.gmra.mxu3 %vm1445_vm5, %v918_v44  ;;  %2564 = vmatmul.msk.f32.gmra.mxu1 %vm1975_vm6, %v1834_v54  ;;  %v570_v62 = vadd.f32 %v3235_v13, %v3166_v46  ;;  %v1001_v13 = vadd.s32 176, %v3203_v8 }
 0x1f9   : > { %v787_v30 = vadd.f32 %v3209_v11, %v751_v41 }
 0x1fa   : > { %2253 = vst [vmem:[%s3055_s8 + $0x8] sm:$0xff] %v2221_v34  ;;  %v2285_v20 = vadd.f32 %v2221_v34, %v2220_v14  ;;  %v2323_v4 = vmul.f32 %v2221_v34, %v2221_v34  ;;  %v1710_v17 = vpop.f32.mrf.mxu0 }
 0x1fb   : > { %v819_v63 = vmax.f32 %v787_v30, 0.0  ;;  %v1594_v12 = vpop.f32.mrf.mxu3 }
 0x1fc   : > { %v2354_v1 = vadd.f32 %v2323_v4, %v2322_v40  ;;  %v1708_v7 = vadd.f32 %v1707_v28, %v1594_v12  ;;  %v1913_v28 = vadd.s32 1, %v1148_v24  ;;  %v1169_v24 = vand.u32 15, %v1001_v13 }
 0x1fd   : > { %1757 = vmatmul.f32.gmra.mxu0 %v819_v63  ;;  %v2094_v51 = vpop.f32.mrf.mxu1  ;;  %v919_v19 = vrot.slane %v819_v63, 7  ;;  %v1835_v10 = vrot.slane %v819_v63, 1 }
 0x1fe   : > { %v2186_v31 = vadd.f32 %v2094_v51, %v1708_v7  ;;  %v696_v25 = vpop.f32.mrf.mxu2  ;;  %vm1977_vm8 = vcmp.lt.s32.totalorder %v1913_v28, 16 }
 0x1ff   : > { %v752_v23 = vadd.f32 %v696_v25, %v567_v48  ;;  %v920_v14 = vsel %vm881_vm0, %v917_v15, %v919_v19  ;;  %v1836_v29 = vsel %vm1797_vm2, %v1833_v33, %v1835_v10 }
 0x200   : > { %v2222_v2 = vadd.f32 %v3333_v50, %v2186_v31  ;;  %1644 = vmatmul.f32.gmra.mxu3 %v920_v14  ;;  %2141 = vmatmul.f32.gmra.mxu1 %v1836_v29 }
 0x201   : > { %v788_v37 = vadd.f32 %v3209_v11, %v752_v23 }
 0x202   : > { %2254 = vst [vmem:[%s3055_s8 + $0x10] sm:$0xff] %v2222_v2  ;;  %v2286_v45 = vadd.f32 %v2285_v20, %v2222_v2  ;;  %v2324_v61 = vmul.f32 %v2222_v2, %v2222_v2  ;;  %v1713_v43 = vpop.f32.mrf.mxu0  ;;  %v1000_v20 = vadd.s32 168, %v3203_v8 }
 0x203   : > { %v820_v6 = vmax.f32 %v788_v37, 0.0  ;;  %v1597_v58 = vpop.f32.mrf.mxu3 }
 0x204   : > { %v2355_v15 = vadd.f32 %v2354_v1, %v2324_v61  ;;  %v1711_v53 = vadd.f32 %v1710_v17, %v1597_v58  ;;  %v573_v1 = vadd.f32 %v3243_v49, %v3169_v56  ;;  %v1162_v31 = vand.u32 15, %v1000_v20 }
 0x205   : > { %v921_v33 = vrot.slane %v820_v6, 7  ;;  %v1837_v41 = vrot.slane %v820_v6, 1  ;;  %1760 = vmatmul.f32.gmra.mxu0 %v820_v6  ;;  %v2097_v44 = vpop.f32.mrf.mxu1  ;;  %v1417_v49 = vadd.s32 4294967295, %v1169_v24  ;;  %v576_v58 = vadd.f32 %v3252_v55, %v3172_v3 }
 0x206   : > { %v2187_v54 = vadd.f32 %v2097_v44, %v1711_v53  ;;  %v699_v34 = vpop.f32.mrf.mxu2  ;;  %v1915_v26 = vadd.s32 1, %v1162_v31  ;;  %v1003_v55 = vadd.s32 192, %v3203_v8 }
 0x207   : > { %v753_v30 = vadd.f32 %v699_v34, %v570_v62  ;;  %v922_v38 = vsel %vm881_vm0, %v919_v19, %v921_v33  ;;  %v1838_v5 = vsel %vm1797_vm2, %v1835_v10, %v1837_v41  ;;  %vm1449_vm9 = vcmp.ge.s32.totalorder %v1417_v49, 0 }
 0x208   : > { %v2223_v40 = vadd.f32 %v3333_v50, %v2187_v54  ;;  %2550 = vmatmul.msk.f32.gmra.mxu3 %vm1447_vm7, %v922_v38  ;;  %2565 = vmatmul.msk.f32.gmra.mxu1 %vm1977_vm8, %v1838_v5  ;;  %vm1979_vm10 = vcmp.lt.s32.totalorder %v1915_v26, 16 }
 0x209   : > { %v789_v46 = vadd.f32 %v3209_v11, %v753_v30 }
 0x20a   : > { %2255 = vst [vmem:[%s3055_s8 + $0x18] sm:$0xff] %v2223_v40  ;;  %v2287_v4 = vadd.f32 %v2286_v45, %v2223_v40  ;;  %v2325_v17 = vmul.f32 %v2223_v40, %v2223_v40  ;;  %v1716_v63 = vpop.f32.mrf.mxu0  ;;  %v1002_v40 = vadd.s32 184, %v3203_v8 }
 0x20b   : > { %v821_v12 = vmax.f32 %v789_v46, 0.0  ;;  %v1600_v48 = vpop.f32.mrf.mxu3 }
 0x20c   : > { %v2356_v7 = vadd.f32 %v2355_v15, %v2325_v17  ;;  %v1714_v51 = vadd.f32 %v1713_v43, %v1600_v48 }
 0x20d   : > { %1763 = vmatmul.f32.gmra.mxu0 %v821_v12  ;;  %v2100_v19 = vpop.f32.mrf.mxu1  ;;  %v923_v10 = vrot.slane %v821_v12, 7  ;;  %v1839_v21 = vrot.slane %v821_v12, 1 }
 0x20e   : > { %v2188_v25 = vadd.f32 %v2100_v19, %v1714_v51  ;;  %v702_v23 = vpop.f32.mrf.mxu2  ;;  %v1183_v19 = vand.u32 15, %v1003_v55  ;;  %v585_v55 = vadd.f32 %v3277_v39, %v3181_v22 }
 0x20f   : > { %v754_v14 = vadd.f32 %v702_v23, %v573_v1  ;;  %v924_v29 = vsel %vm881_vm0, %v921_v33, %v923_v10  ;;  %v1840_v2 = vsel %vm1797_vm2, %v1837_v41, %v1839_v21 }
 0x210   : > { %v2224_v37 = vadd.f32 %v3333_v50, %v2188_v25  ;;  %1650 = vmatmul.f32.gmra.mxu3 %v924_v29  ;;  %2147 = vmatmul.f32.gmra.mxu1 %v1840_v2 }
 0x211   : > { %v790_v56 = vadd.f32 %v3209_v11, %v754_v14 }
 0x212   : > { %2256 = vst [vmem:[%s3055_s8 + $0x20] sm:$0xff] %v2224_v37  ;;  %v2288_v28 = vadd.f32 %v2287_v4, %v2224_v37  ;;  %v2326_v45 = vmul.f32 %v2224_v37, %v2224_v37  ;;  %v1719_v61 = vpop.f32.mrf.mxu0 }
 0x213   : > { %v822_v43 = vmax.f32 %v790_v56, 0.0  ;;  %v1603_v6 = vpop.f32.mrf.mxu3 }
 0x214   : > { %v2357_v62 = vadd.f32 %v2356_v7, %v2326_v45  ;;  %v1717_v15 = vadd.f32 %v1716_v63, %v1603_v6  ;;  %v579_v63 = vadd.f32 %v3261_v42, %v3175_v9  ;;  %v1419_v42 = vadd.s32 4294967295, %v1183_v19 }
 0x215   : > { %v925_v53 = vrot.slane %v822_v43, 7  ;;  %v1841_v33 = vrot.slane %v822_v43, 1  ;;  %1766 = vmatmul.f32.gmra.mxu0 %v822_v43  ;;  %v2103_v41 = vpop.f32.mrf.mxu1 }
 0x216   : > { %v2189_v44 = vadd.f32 %v2103_v41, %v1717_v15  ;;  %v705_v54 = vpop.f32.mrf.mxu2  ;;  %vm1451_vm11 = vcmp.ge.s32.totalorder %v1419_v42, 0 }
 0x217   : > { %v755_v34 = vadd.f32 %v705_v54, %v576_v58  ;;  %v926_v30 = vsel %vm881_vm0, %v923_v10, %v925_v53  ;;  %v1842_v38 = vsel %vm1797_vm2, %v1839_v21, %v1841_v33  ;;  %v1176_v10 = vand.u32 15, %v1002_v40 }
 0x218   : > { %v2225_v5 = vadd.f32 %v3333_v50, %v2189_v44  ;;  %2551 = vmatmul.msk.f32.gmra.mxu3 %vm1449_vm9, %v926_v30  ;;  %2566 = vmatmul.msk.f32.gmra.mxu1 %vm1979_vm10, %v1842_v38  ;;  %v1005_v44 = vadd.s32 208, %v3203_v8  ;;  %v1004_v54 = vadd.s32 200, %v3203_v8 }
 0x219   : > { %v791_v3 = vadd.f32 %v3209_v11, %v755_v34  ;;  %v1917_v29 = vadd.s32 1, %v1176_v10 }
 0x21a   : > { %2257 = vst [vmem:[%s3055_s8 + $0x28] sm:$0xff] %v2225_v5  ;;  %v2289_v46 = vadd.f32 %v2288_v28, %v2225_v5  ;;  %v2327_v13 = vmul.f32 %v2225_v5, %v2225_v5  ;;  %v1722_v20 = vpop.f32.mrf.mxu0  ;;  %v582_v28 = vadd.f32 %v3267_v32, %v3178_v16  ;;  %v3396_v16 = vld [vmem:[%s3538_s2] ss:$0 sm:$0xff] }
 0x21b   : > { %v823_v4 = vmax.f32 %v791_v3, 0.0  ;;  %v1606_v17 = vpop.f32.mrf.mxu3  ;;  %vm1981_vm12 = vcmp.lt.s32.totalorder %v1917_v29, 16 }
 0x21c   : > { %v2358_v12 = vadd.f32 %v2357_v62, %v2327_v13  ;;  %v1720_v48 = vadd.f32 %v1719_v61, %v1606_v17  ;;  %v1197_v17 = vand.u32 15, %v1005_v44 }
 0x21d   : > { %1769 = vmatmul.f32.gmra.mxu0 %v823_v4  ;;  %v2106_v1 = vpop.f32.mrf.mxu1  ;;  %v927_v7 = vrot.slane %v823_v4, 7  ;;  %v1843_v51 = vrot.slane %v823_v4, 1 }
 0x21e   : > { %v2190_v21 = vadd.f32 %v2106_v1, %v1720_v48  ;;  %v708_v24 = vpop.f32.mrf.mxu2  ;;  %v1421_v39 = vadd.s32 4294967295, %v1197_v17 }
 0x21f   : > { %v756_v31 = vadd.f32 %v708_v24, %v579_v63  ;;  %v928_v25 = vsel %vm881_vm0, %v925_v53, %v927_v7  ;;  %v1844_v23 = vsel %vm1797_vm2, %v1841_v33, %v1843_v51  ;;  %v1190_v63 = vand.u32 15, %v1004_v54 }
 0x220   : > { %v2226_v14 = vadd.f32 %v3333_v50, %v2190_v21  ;;  %1656 = vmatmul.f32.gmra.mxu3 %v928_v25  ;;  %2153 = vmatmul.f32.gmra.mxu1 %v1844_v23  ;;  %vm1453_vm13 = vcmp.ge.s32.totalorder %v1421_v39, 0 }
 0x221   : > { %v792_v9 = vadd.f32 %v3209_v11, %v756_v31  ;;  %v1919_v10 = vadd.s32 1, %v1190_v63 }
 0x222   : > { %2258 = vst [vmem:[%s3055_s8 + $0x30] sm:$0xff] %v2226_v14  ;;  %v2290_v2 = vadd.f32 %v2289_v46, %v2226_v14  ;;  %v2328_v37 = vmul.f32 %v2226_v14, %v2226_v14  ;;  %v1725_v56 = vpop.f32.mrf.mxu0  ;;  %v588_v14 = vadd.f32 %v3286_v35, %v3184_v27  ;;  %v1007_v35 = vadd.s32 224, %v3203_v8 }
 0x223   : > { %v824_v49 = vmax.f32 %v792_v9, 0.0  ;;  %v1609_v26 = vpop.f32.mrf.mxu3  ;;  %vm1983_vm14 = vcmp.lt.s32.totalorder %v1919_v10, 16 }
 0x224   : > { %v2359_v45 = vadd.f32 %v2358_v12, %v2328_v37  ;;  %v1723_v61 = vadd.f32 %v1722_v20, %v1609_v26 }
 0x225   : > { %v929_v43 = vrot.slane %v824_v49, 7  ;;  %v1845_v6 = vrot.slane %v824_v49, 1  ;;  %1772 = vmatmul.f32.gmra.mxu0 %v824_v49  ;;  %v2109_v58 = vpop.f32.mrf.mxu1 }
 0x226   : > { %v2191_v11 = vadd.f32 %v2109_v58, %v1723_v61  ;;  %v711_v62 = vpop.f32.mrf.mxu2 }
 0x227   : > { %v757_v15 = vadd.f32 %v711_v62, %v582_v28  ;;  %v930_v53 = vsel %vm881_vm0, %v927_v7, %v929_v43  ;;  %v1846_v33 = vsel %vm1797_vm2, %v1843_v51, %v1845_v6 }
 0x228   : > { %v2227_v41 = vadd.f32 %v3333_v50, %v2191_v11  ;;  %2552 = vmatmul.msk.f32.gmra.mxu3 %vm1451_vm11, %v930_v53  ;;  %2567 = vmatmul.msk.f32.gmra.mxu1 %vm1981_vm12, %v1846_v33  ;;  %v591_v53 = vadd.f32 %v3293_v47, %v3188_v36 }
 0x229   : > { %v793_v32 = vadd.f32 %v3396_v16, %v757_v15 }
 0x22a   : > { %2259 = vst [vmem:[%s3055_s8 + $0x38] sm:$0xff] %v2227_v41  ;;  %v2291_v34 = vadd.f32 %v2290_v2, %v2227_v41  ;;  %v2329_v30 = vmul.f32 %v2227_v41, %v2227_v41  ;;  %v1728_v38 = vpop.f32.mrf.mxu0 }
 0x22b   : > { %v825_v5 = vmax.f32 %v793_v32, 0.0  ;;  %v1612_v3 = vpop.f32.mrf.mxu3 }
 0x22c   : > { %v2360_v40 = vadd.f32 %v2359_v45, %v2329_v30  ;;  %v1726_v46 = vadd.f32 %v1725_v56, %v1612_v3 }
 0x22d   : > { %1775 = vmatmul.f32.gmra.mxu0 %v825_v5  ;;  %v2112_v13 = vpop.f32.mrf.mxu1  ;;  %v931_v20 = vrot.slane %v825_v5, 7  ;;  %v1847_v4 = vrot.slane %v825_v5, 1 }
 0x22e   : > { %v2192_v12 = vadd.f32 %v2112_v13, %v1726_v46  ;;  %v714_v48 = vpop.f32.mrf.mxu2 }
 0x22f   : > { %v758_v1 = vadd.f32 %v714_v48, %v585_v55  ;;  %v932_v7 = vsel %vm881_vm0, %v929_v43, %v931_v20  ;;  %v1848_v51 = vsel %vm1797_vm2, %v1845_v6, %v1847_v4  ;;  %v1006_v43 = vadd.s32 216, %v3203_v8 }
 0x230   : > { %v2228_v19 = vadd.f32 %v3333_v50, %v2192_v12  ;;  %1662 = vmatmul.f32.gmra.mxu3 %v932_v7  ;;  %2159 = vmatmul.f32.gmra.mxu1 %v1848_v51  ;;  %v594_v48 = vadd.f32 %v3301_v18, %v3191_v52  ;;  %v1009_v18 = vadd.s32 240, %v3203_v8 }
 0x231   : > { %v794_v22 = vadd.f32 %v3396_v16, %v758_v1  ;;  %v1204_v30 = vand.u32 15, %v1006_v43 }
 0x232   : > { %2260 = vst [vmem:[%s3055_s8 + $0x40] sm:$0xff] %v2228_v19  ;;  %v2292_v21 = vadd.f32 %v2291_v34, %v2228_v19  ;;  %v2330_v24 = vmul.f32 %v2228_v19, %v2228_v19  ;;  %v1731_v31 = vpop.f32.mrf.mxu0  ;;  %v1211_v34 = vand.u32 15, %v1007_v35 }
 0x233   : > { %v826_v25 = vmax.f32 %v794_v22, 0.0  ;;  %v1615_v23 = vpop.f32.mrf.mxu3  ;;  %v1921_v13 = vadd.s32 1, %v1204_v30 }
 0x234   : > { %v2361_v9 = vadd.f32 %v2360_v40, %v2330_v24  ;;  %v1729_v42 = vadd.f32 %v1728_v38, %v1615_v23  ;;  %v1423_v47 = vadd.s32 4294967295, %v1211_v34  ;;  %v1008_v23 = vadd.s32 232, %v3203_v8 }
 0x235   : > { %v933_v29 = vrot.slane %v826_v25, 7  ;;  %v1849_v2 = vrot.slane %v826_v25, 1  ;;  %1778 = vmatmul.f32.gmra.mxu0 %v826_v25  ;;  %v2115_v37 = vpop.f32.mrf.mxu1  ;;  %vm1985_vm1 = vcmp.lt.s32.totalorder %v1921_v13, 16 }
 0x236   : > { %v2193_v56 = vadd.f32 %v2115_v37, %v1729_v42  ;;  %v717_v49 = vpop.f32.mrf.mxu2  ;;  %vm1455_vm15 = vcmp.ge.s32.totalorder %v1423_v47, 0  ;;  %v597_v37 = vadd.f32 %v3309_v59, %v3196_v60 }
 0x237   : > { %v759_v26 = vadd.f32 %v717_v49, %v588_v14  ;;  %v934_v28 = vsel %vm881_vm0, %v931_v20, %v933_v29  ;;  %v1850_v45 = vsel %vm1797_vm2, %v1847_v4, %v1849_v2 }
 0x238   : > { %v2229_v61 = vadd.f32 %v3333_v50, %v2193_v56  ;;  %2553 = vmatmul.msk.f32.gmra.mxu3 %vm1453_vm13, %v934_v28  ;;  %2568 = vmatmul.msk.f32.gmra.mxu1 %vm1983_vm14, %v1850_v45 }
 0x239   : > { %v795_v27 = vadd.f32 %v3396_v16, %v759_v26 }
 0x23a   : > { %2261 = vst [vmem:[%s3055_s8 + $0x48] sm:$0xff] %v2229_v61  ;;  %v2293_v6 = vadd.f32 %v2292_v21, %v2229_v61  ;;  %v2331_v58 = vmul.f32 %v2229_v61, %v2229_v61  ;;  %v1734_v11 = vpop.f32.mrf.mxu0  ;;  %v1225_v61 = vand.u32 15, %v1009_v18 }
 0x23b   : > { %v827_v62 = vmax.f32 %v795_v27, 0.0  ;;  %v1618_v15 = vpop.f32.mrf.mxu3  ;;  %v1218_v27 = vand.u32 15, %v1008_v23 }
 0x23c   : > { %v2362_v33 = vadd.f32 %v2361_v9, %v2331_v58  ;;  %v1732_v41 = vadd.f32 %v1731_v31, %v1618_v15  ;;  %v1425_v59 = vadd.s32 4294967295, %v1225_v61 }
 0x23d   : > { %1781 = vmatmul.f32.gmra.mxu0 %v827_v62  ;;  %v2118_v32 = vpop.f32.mrf.mxu1  ;;  %v935_v44 = vrot.slane %v827_v62, 7  ;;  %v1851_v54 = vrot.slane %v827_v62, 1  ;;  %v1923_v15 = vadd.s32 1, %v1218_v27 }
 0x23e   : > { %v2194_v38 = vadd.f32 %v2118_v32, %v1732_v41  ;;  %v720_v5 = vpop.f32.mrf.mxu2  ;;  %vm1457_vm3 = vcmp.ge.s32.totalorder %v1425_v59, 0 }
 0x23f   : > { %v760_v3 = vadd.f32 %v720_v5, %v591_v53  ;;  %v936_v55 = vsel %vm881_vm0, %v933_v29, %v935_v44  ;;  %v1852_v40 = vsel %vm1797_vm2, %v1849_v2, %v1851_v54  ;;  %vm1987_vm4 = vcmp.lt.s32.totalorder %v1923_v15, 16 }
 0x240   : > { %v2230_v46 = vadd.f32 %v3333_v50, %v2194_v38  ;;  %1668 = vmatmul.f32.gmra.mxu3 %v936_v55  ;;  %2165 = vmatmul.f32.gmra.mxu1 %v1852_v40 }
 0x241   : > { %v796_v36 = vadd.f32 %v3396_v16, %v760_v3 }
 0x242   : > { %2262 = vst [vmem:[%s3055_s8 + $0x50] sm:$0xff] %v2230_v46  ;;  %v2294_v20 = vadd.f32 %v2293_v6, %v2230_v46  ;;  %v2332_v4 = vmul.f32 %v2230_v46, %v2230_v46  ;;  %v1737_v17 = vpop.f32.mrf.mxu0 }
 0x243   : > { %v828_v63 = vmax.f32 %v796_v36, 0.0  ;;  %v1621_v12 = vpop.f32.mrf.mxu3 }
 0x244   : > { %v2363_v1 = vadd.f32 %v2362_v33, %v2332_v4  ;;  %v1735_v7 = vadd.f32 %v1734_v11, %v1621_v12 }
 0x245   : > { %v937_v51 = vrot.slane %v828_v63, 7  ;;  %v1853_v19 = vrot.slane %v828_v63, 1  ;;  %1784 = vmatmul.f32.gmra.mxu0 %v828_v63  ;;  %v2121_v22 = vpop.f32.mrf.mxu1 }
 0x246   : > { %v2195_v39 = vadd.f32 %v2121_v22, %v1735_v7  ;;  %v723_v10 = vpop.f32.mrf.mxu2 }
 0x247   : > { %v761_v21 = vadd.f32 %v723_v10, %v594_v48  ;;  %v938_v24 = vsel %vm881_vm0, %v935_v44, %v937_v51  ;;  %v1854_v31 = vsel %vm1797_vm2, %v1851_v54, %v1853_v19  ;;  %v600_v54 = vadd.f32 %v3319_v57, %v3199_v0 }
 0x248   : > { %v2231_v25 = vadd.f32 %v3333_v50, %v2195_v39  ;;  %2554 = vmatmul.msk.f32.gmra.mxu3 %vm1455_vm15, %v938_v24  ;;  %2569 = vmatmul.msk.f32.gmra.mxu1 %vm1985_vm1, %v1854_v31  ;;  %v1010_v57 = vadd.s32 248, %v3203_v8 }
 0x249   : > { %v797_v52 = vadd.f32 %v3396_v16, %v761_v21 }
 0x24a   : > { %2263 = vst [vmem:[%s3055_s8 + $0x58] sm:$0xff] %v2231_v25  ;;  %v2295_v14 = vadd.f32 %v2294_v20, %v2231_v25  ;;  %v2333_v9 = vmul.f32 %v2231_v25, %v2231_v25  ;;  %v1740_v42 = vpop.f32.mrf.mxu0  ;;  %v1232_v22 = vand.u32 15, %v1010_v57 }
 0x24b   : > { %v829_v29 = vmax.f32 %v797_v52, 0.0  ;;  %v1624_v2 = vpop.f32.mrf.mxu3 }
 0x24c   : > { %v2364_v56 = vadd.f32 %v2363_v1, %v2333_v9  ;;  %v1738_v49 = vadd.f32 %v1737_v17, %v1624_v2  ;;  %v1925_v21 = vadd.s32 1, %v1232_v22 }
 0x24d   : > { %1787 = vmatmul.f32.gmra.mxu0 %v829_v29  ;;  %v2124_v26 = vpop.f32.mrf.mxu1  ;;  %v939_v28 = vrot.slane %v829_v29, 7  ;;  %v1855_v45 = vrot.slane %v829_v29, 1 }
 0x24e   : > { %v2196_v35 = vadd.f32 %v2124_v26, %v1738_v49  ;;  %v726_v43 = vpop.f32.mrf.mxu2  ;;  %vm1989_vm5 = vcmp.lt.s32.totalorder %v1925_v21, 16 }
 0x24f   : > { %v762_v6 = vadd.f32 %v726_v43, %v597_v37  ;;  %v940_v58 = vsel %vm881_vm0, %v937_v51, %v939_v28  ;;  %v1856_v11 = vsel %vm1797_vm2, %v1853_v19, %v1855_v45 }
 0x250   : > { %v2232_v62 = vadd.f32 %v3333_v50, %v2196_v35  ;;  %1674 = vmatmul.f32.gmra.mxu3 %v940_v58  ;;  %2171 = vmatmul.f32.gmra.mxu1 %v1856_v11 }
 0x251   : > { %v798_v60 = vadd.f32 %v3396_v16, %v762_v6 }
 0x252   : > { %2264 = vst [vmem:[%s3055_s8 + $0x60] sm:$0xff] %v2232_v62  ;;  %v2296_v53 = vadd.f32 %v2295_v14, %v2232_v62  ;;  %v2334_v33 = vmul.f32 %v2232_v62, %v2232_v62  ;;  %v1743_v41 = vpop.f32.mrf.mxu0 }
 0x253   : > { %v830_v32 = vmax.f32 %v798_v60, 0.0  ;;  %v1627_v44 = vpop.f32.mrf.mxu3 }
 0x254   : > { %v2365_v34 = vadd.f32 %v2364_v56, %v2334_v33  ;;  %v1741_v30 = vadd.f32 %v1740_v42, %v1627_v44 }
 0x255   : > { %v941_v38 = vrot.slane %v830_v32, 7  ;;  %v1857_v5 = vrot.slane %v830_v32, 1  ;;  %1790 = vmatmul.f32.gmra.mxu0 %v830_v32  ;;  %v2127_v3 = vpop.f32.mrf.mxu1 }
 0x256   : > { %v2197_v55 = vadd.f32 %v2127_v3, %v1741_v30  ;;  %v729_v40 = vpop.f32.mrf.mxu2 }
 0x257   : > { %v763_v46 = vadd.f32 %v729_v40, %v600_v54  ;;  %v942_v36 = vsel %vm881_vm0, %v939_v28, %v941_v38  ;;  %v1858_v47 = vsel %vm1797_vm2, %v1855_v45, %v1857_v5 }
 0x258   : > { %v2233_v13 = vadd.f32 %v3333_v50, %v2197_v55  ;;  %2555 = vmatmul.msk.f32.gmra.mxu3 %vm1457_vm3, %v942_v36  ;;  %2570 = vmatmul.msk.f32.gmra.mxu1 %vm1987_vm4, %v1858_v47 }
 0x259   : > { %v799_v0 = vadd.f32 %v3396_v16, %v763_v46 }
 0x25a   : > { %2265 = vst [vmem:[%s3055_s8 + $0x68] sm:$0xff] %v2233_v13  ;;  %v2297_v20 = vadd.f32 %v2296_v53, %v2233_v13  ;;  %v2335_v4 = vmul.f32 %v2233_v13, %v2233_v13  ;;  %v1746_v17 = vpop.f32.mrf.mxu0 }
 0x25b   : > { %v831_v63 = vmax.f32 %v799_v0, 0.0  ;;  %v1630_v12 = vpop.f32.mrf.mxu3 }
 0x25c   : > { %v2366_v48 = vadd.f32 %v2365_v34, %v2335_v4  ;;  %v1744_v1 = vadd.f32 %v1743_v41, %v1630_v12 }
 0x25d   : > { %1793 = vmatmul.f32.gmra.mxu0 %v831_v63  ;;  %v2130_v7 = vpop.f32.mrf.mxu1  ;;  %v943_v51 = vrot.slane %v831_v63, 7  ;;  %v1859_v19 = vrot.slane %v831_v63, 1 }
 0x25e   : > { %v2198_v39 = vadd.f32 %v2130_v7, %v1744_v1 }
 0x25f   : > { %v944_v10 = vsel %vm881_vm0, %v941_v38, %v943_v51  ;;  %v1860_v16 = vsel %vm1797_vm2, %v1857_v5, %v1859_v19  ;;  %v1893_v42 = vsel %vm1797_vm2, %v1859_v19, 0.0 }
 0x260   : > { %v2234_v8 = vadd.f32 %v3333_v50, %v2198_v39  ;;  %1680 = vmatmul.f32.gmra.mxu3 %v944_v10  ;;  %2177 = vmatmul.f32.gmra.mxu1 %v1860_v16 }
 0x262   : > { %2266 = vst [vmem:[%s3055_s8 + $0x70] sm:$0xff] %v2234_v8  ;;  %v2298_v24 = vadd.f32 %v2297_v20, %v2234_v8  ;;  %v2336_v31 = vmul.f32 %v2234_v8, %v2234_v8  ;;  %v1749_v25 = vpop.f32.mrf.mxu0 }
 0x263   : > { %v1633_v52 = vpop.f32.mrf.mxu3 }
 0x264   : > { %v2367_v18 = vadd.f32 %v2366_v48, %v2336_v31  ;;  %v1747_v23 = vadd.f32 %v1746_v17, %v1633_v52 }
 0x265   : > { %v2133_v14 = vpop.f32.mrf.mxu1 }
 0x266   : > { %v2199_v9 = vadd.f32 %v2133_v14, %v1747_v23 }
 0x268   : > { %v2235_v29 = vadd.f32 %v3333_v50, %v2199_v9  ;;  %2571 = vmatmul.msk.f32.gmra.mxu1 %vm1989_vm5, %v1893_v42 }
 0x26a   : > { %2267 = vst [vmem:[%s3055_s8 + $0x78] sm:$0xff] %v2235_v29  ;;  %v2299_v2 = vadd.f32 %v2298_v24, %v2235_v29  ;;  %v2337_v37 = vmul.f32 %v2235_v29, %v2235_v29  ;;  %v1752_v56 = vpop.f32.mrf.mxu0 }
 0x26b   : > { %v1636_v49 = vpop.f32.mrf.mxu3 }
 0x26c   : > { %v2368_v26 = vadd.f32 %v2367_v18, %v2337_v37  ;;  %v1750_v28 = vadd.f32 %v1749_v25, %v1636_v49 }
 0x26d   : > { %v2136_v45 = vpop.f32.mrf.mxu1 }
 0x26e   : > { %v2200_v61 = vadd.f32 %v2136_v45, %v1750_v28 }
 0x270   : > { %v2236_v27 = vadd.f32 %v3333_v50, %v2200_v61 }
 0x272   : > { %2268 = vst [vmem:[%s3055_s8 + $0x80] sm:$0xff] %v2236_v27  ;;  %v2300_v35 = vadd.f32 %v2299_v2, %v2236_v27  ;;  %v2338_v43 = vmul.f32 %v2236_v27, %v2236_v27  ;;  %v1755_v6 = vpop.f32.mrf.mxu0 }
 0x273   : > { %v1639_v58 = vpop.f32.mrf.mxu3 }
 0x274   : > { %v2369_v11 = vadd.f32 %v2368_v26, %v2338_v43  ;;  %v1753_v62 = vadd.f32 %v1752_v56, %v1639_v58 }
 0x275   : > { %v2139_v60 = vpop.f32.mrf.mxu1 }
 0x276   : > { %v2201_v59 = vadd.f32 %v2139_v60, %v1753_v62 }
 0x278   : > { %v2237_v15 = vadd.f32 %v3333_v50, %v2201_v59 }
 0x27a   : > { %2269 = vst [vmem:[%s3055_s8 + $0x88] sm:$0xff] %v2237_v15  ;;  %v2301_v53 = vadd.f32 %v2300_v35, %v2237_v15  ;;  %v2339_v33 = vmul.f32 %v2237_v15, %v2237_v15  ;;  %v1758_v41 = vpop.f32.mrf.mxu0 }
 0x27b   : > { %v1642_v32 = vpop.f32.mrf.mxu3 }
 0x27c   : > { %v2370_v44 = vadd.f32 %v2369_v11, %v2339_v33  ;;  %v1756_v54 = vadd.f32 %v1755_v6, %v1642_v32 }
 0x27d   : > { %v2142_v34 = vpop.f32.mrf.mxu1 }
 0x27e   : > { %v2202_v30 = vadd.f32 %v2142_v34, %v1756_v54 }
 0x280   : > { %v2238_v38 = vadd.f32 %v3333_v50, %v2202_v30 }
 0x282   : > { %2270 = vst [vmem:[%s3055_s8 + $0x90] sm:$0xff] %v2238_v38  ;;  %v2302_v5 = vadd.f32 %v2301_v53, %v2238_v38  ;;  %v2340_v3 = vmul.f32 %v2238_v38, %v2238_v38  ;;  %v1761_v55 = vpop.f32.mrf.mxu0 }
 0x283   : > { %v1645_v40 = vpop.f32.mrf.mxu3 }
 0x284   : > { %v2371_v46 = vadd.f32 %v2370_v44, %v2340_v3  ;;  %v1759_v36 = vadd.f32 %v1758_v41, %v1645_v40 }
 0x285   : > { %v2145_v47 = vpop.f32.mrf.mxu1 }
 0x286   : > { %v2203_v13 = vadd.f32 %v2145_v47, %v1759_v36 }
 0x288   : > { %v2239_v0 = vadd.f32 %v3333_v50, %v2203_v13 }
 0x28a   : > { %2271 = vst [vmem:[%s3055_s8 + $0x98] sm:$0xff] %v2239_v0  ;;  %v2303_v57 = vadd.f32 %v2302_v5, %v2239_v0  ;;  %v2341_v20 = vmul.f32 %v2239_v0, %v2239_v0  ;;  %v1764_v4 = vpop.f32.mrf.mxu0 }
 0x28b   : > { %v1648_v17 = vpop.f32.mrf.mxu3 }
 0x28c   : > { %v2372_v63 = vadd.f32 %v2371_v46, %v2341_v20  ;;  %v1762_v12 = vadd.f32 %v1761_v55, %v1648_v17 }
 0x28d   : > { %v2148_v48 = vpop.f32.mrf.mxu1 }
 0x28e   : > { %v2204_v1 = vadd.f32 %v2148_v48, %v1762_v12 }
 0x290   : > { %v2240_v7 = vadd.f32 %v3333_v50, %v2204_v1 }
 0x292   : > { %2272 = vst [vmem:[%s3055_s8 + $0xa0] sm:$0xff] %v2240_v7  ;;  %v3466_v51 = vadd.f32 %v2303_v57, %v2240_v7  ;;  %v2342_v19 = vmul.f32 %v2240_v7, %v2240_v7  ;;  %v1767_v22 = vpop.f32.mrf.mxu0 }
 0x293   : > { %v1651_v39 = vpop.f32.mrf.mxu3 }
 0x294   : > { %v2373_v10 = vadd.f32 %v2372_v63, %v2342_v19  ;;  %v1765_v16 = vadd.f32 %v1764_v4, %v1651_v39 }
 0x295   : > { %v2151_v8 = vpop.f32.mrf.mxu1 }
 0x296   : > { %v2205_v21 = vadd.f32 %v2151_v8, %v1765_v16 }
 0x298   : > { %v2241_v24 = vadd.f32 %v3333_v50, %v2205_v21 }
 0x29a   : > { %2273 = vst [vmem:[%s3055_s8 + $0xa8] sm:$0xff] %v2241_v24  ;;  %v1770_v31 = vpop.f32.mrf.mxu0  ;;  %v2343_v13 = vmul.f32 %v2241_v24, %v2241_v24  ;;  %v2305_v20 = vadd.f32 %v3466_v51, %v2241_v24 }
 0x29b   : > { %v1654_v25 = vpop.f32.mrf.mxu3 }
 0x29c   : > { %v1768_v52 = vadd.f32 %v1767_v22, %v1654_v25  ;;  %v2374_v63 = vadd.f32 %v2373_v10, %v2343_v13 }
 0x29d   : > { %v2154_v18 = vpop.f32.mrf.mxu1 }
 0x29e   : > { %v2206_v23 = vadd.f32 %v2154_v18, %v1768_v52 }
 0x2a0   : > { %v2242_v14 = vadd.f32 %v3333_v50, %v2206_v23 }
 0x2a2   : > { %2274 = vst [vmem:[%s3055_s8 + $0xb0] sm:$0xff] %v2242_v14  ;;  %v1773_v9 = vpop.f32.mrf.mxu0  ;;  %v2344_v4 = vmul.f32 %v2242_v14, %v2242_v14  ;;  %v2306_v12 = vadd.f32 %v2305_v20, %v2242_v14 }
 0x2a3   : > { %v1657_v42 = vpop.f32.mrf.mxu3 }
 0x2a4   : > { %v1771_v29 = vadd.f32 %v1770_v31, %v1657_v42  ;;  %v2375_v19 = vadd.f32 %v2374_v63, %v2344_v4 }
 0x2a5   : > { %v2157_v2 = vpop.f32.mrf.mxu1 }
 0x2a6   : > { %v2207_v37 = vadd.f32 %v2157_v2, %v1771_v29 }
 0x2a8   : > { %v2243_v56 = vadd.f32 %v3333_v50, %v2207_v37 }
 0x2aa   : > { %2275 = vst [vmem:[%s3055_s8 + $0xb8] sm:$0xff] %v2243_v56  ;;  %v1776_v49 = vpop.f32.mrf.mxu0  ;;  %v2345_v48 = vmul.f32 %v2243_v56, %v2243_v56  ;;  %v2307_v22 = vadd.f32 %v2306_v12, %v2243_v56 }
 0x2ab   : > { %v1660_v26 = vpop.f32.mrf.mxu3 }
 0x2ac   : > { %v1774_v28 = vadd.f32 %v1773_v9, %v1660_v26  ;;  %v2376_v8 = vadd.f32 %v2375_v19, %v2345_v48  ;;  %v2696_v9 = vld [vmem:[%s3540_s4] ss:$0 sm:$0xff] }
 0x2ad   : > { %v2160_v45 = vpop.f32.mrf.mxu1 }
 0x2ae   : > { %v2208_v61 = vadd.f32 %v2160_v45, %v1774_v28 }
 0x2b0   : > { %v2244_v27 = vadd.f32 %v3333_v50, %v2208_v61 }
 0x2b2   : > { %2276 = vst [vmem:[%s3055_s8 + $0xc0] sm:$0xff] %v2244_v27  ;;  %v1779_v35 = vpop.f32.mrf.mxu0  ;;  %v2346_v39 = vmul.f32 %v2244_v27, %v2244_v27  ;;  %v2308_v21 = vadd.f32 %v2307_v22, %v2244_v27 }
 0x2b3   : > { %v1663_v43 = vpop.f32.mrf.mxu3 }
 0x2b4   : > { %v1777_v6 = vadd.f32 %v1776_v49, %v1663_v43  ;;  %v2377_v24 = vadd.f32 %v2376_v8, %v2346_v39 }
 0x2b5   : > { %v2163_v58 = vpop.f32.mrf.mxu1 }
 0x2b6   : > { %v2209_v11 = vadd.f32 %v2163_v58, %v1777_v6 }
 0x2b8   : > { %v2245_v62 = vadd.f32 %v3333_v50, %v2209_v11 }
 0x2ba   : > { %2277 = vst [vmem:[%s3055_s8 + $0xc8] sm:$0xff] %v2245_v62  ;;  %v1782_v60 = vpop.f32.mrf.mxu0  ;;  %v2347_v31 = vmul.f32 %v2245_v62, %v2245_v62  ;;  %v2309_v52 = vadd.f32 %v2308_v21, %v2245_v62 }
 0x2bb   : > { %v1666_v59 = vpop.f32.mrf.mxu3 }
 0x2bc   : > { %v1780_v15 = vadd.f32 %v1779_v35, %v1666_v59  ;;  %v2378_v23 = vadd.f32 %v2377_v24, %v2347_v31 }
 0x2bd   : > { %v2166_v53 = vpop.f32.mrf.mxu1 }
 0x2be   : > { %v2210_v33 = vadd.f32 %v2166_v53, %v1780_v15 }
 0x2c0   : > { %v2246_v41 = vadd.f32 %v3333_v50, %v2210_v33 }
 0x2c2   : > { %2278 = vst [vmem:[%s3055_s8 + $0xd0] sm:$0xff] %v2246_v41  ;;  %v1785_v54 = vpop.f32.mrf.mxu0  ;;  %v2348_v10 = vmul.f32 %v2246_v41, %v2246_v41 }
 0x2c3   : > { %v1669_v32 = vpop.f32.mrf.mxu3 }
 0x2c4   : > { %v1783_v44 = vadd.f32 %v1782_v60, %v1669_v32  ;;  %v2379_v29 = vadd.f32 %v2378_v23, %v2348_v10 }
 0x2c5   : > { %v2169_v34 = vpop.f32.mrf.mxu1 }
 0x2c6   : > { %v2211_v30 = vadd.f32 %v2169_v34, %v1783_v44 }
 0x2c8   : > { %v2247_v38 = vadd.f32 %v3333_v50, %v2211_v30 }
 0x2ca   : > { %2279 = vst [vmem:[%s3055_s8 + $0xd8] sm:$0xff] %v2247_v38  ;;  %v1788_v46 = vpop.f32.mrf.mxu0  ;;  %v2349_v14 = vmul.f32 %v2247_v38, %v2247_v38 }
 0x2cb   : > { %v1672_v5 = vpop.f32.mrf.mxu3 }
 0x2cc   : > { %v1786_v3 = vadd.f32 %v1785_v54, %v1672_v5  ;;  %v2380_v26 = vadd.f32 %v2379_v29, %v2349_v14 }
 0x2cd   : > { %v2172_v55 = vpop.f32.mrf.mxu1 }
 0x2ce   : > { %v2212_v40 = vadd.f32 %v2172_v55, %v1786_v3 }
 0x2d0   : > { %v2248_v36 = vadd.f32 %v3333_v50, %v2212_v40 }
 0x2d2   : > { %2280 = vst [vmem:[%s3055_s8 + $0xe0] sm:$0xff] %v2248_v36  ;;  %v1791_v7 = vpop.f32.mrf.mxu0  ;;  %v2350_v37 = vmul.f32 %v2248_v36, %v2248_v36 }
 0x2d3   : > { %v1675_v47 = vpop.f32.mrf.mxu3 }
 0x2d4   : > { %v1789_v0 = vadd.f32 %v1788_v46, %v1675_v47  ;;  %v2381_v35 = vadd.f32 %v2380_v26, %v2350_v37 }
 0x2d5   : > { %v2175_v57 = vpop.f32.mrf.mxu1 }
 0x2d6   : > { %v2213_v17 = vadd.f32 %v2175_v57, %v1789_v0 }
 0x2d8   : > { %v2249_v1 = vadd.f32 %v3333_v50, %v2213_v17  ;;  %v2310_v50 = vadd.f32 %v2309_v52, %v2246_v41 }
 0x2da   : > { %2281 = vst [vmem:[%s3055_s8 + $0xe8] sm:$0xff] %v2249_v1  ;;  %v2311_v2 = vadd.f32 %v2310_v50, %v2247_v38  ;;  %v1794_v56 = vpop.f32.mrf.mxu0  ;;  %v2351_v45 = vmul.f32 %v2249_v1, %v2249_v1 }
 0x2db   : > { %v1678_v16 = vpop.f32.mrf.mxu3 }
 0x2dc   : > { %v1792_v25 = vadd.f32 %v1791_v7, %v1678_v16  ;;  %v2312_v28 = vadd.f32 %v2311_v2, %v2248_v36  ;;  %v2382_v11 = vadd.f32 %v2381_v35, %v2351_v45 }
 0x2dd   : > { %v2178_v51 = vpop.f32.mrf.mxu1 }
 0x2de   : > { %v2214_v18 = vadd.f32 %v2178_v51, %v1792_v25  ;;  %v2313_v43 = vadd.f32 %v2312_v28, %v2249_v1 }
 0x2e0   : > { %v2250_v42 = vadd.f32 %v2696_v9, %v2214_v18 }
 0x2e2   : > { %2282 = vst [vmem:[%s3055_s8 + $0xf0] sm:$0xff] %v2250_v42  ;;  %v2352_v6 = vmul.f32 %v2250_v42, %v2250_v42  ;;  %v2314_v62 = vadd.f32 %v2313_v43, %v2250_v42 }
 0x2e3   : > { %v1681_v49 = vpop.f32.mrf.mxu3 }
 0x2e4   : > { %v1795_v61 = vadd.f32 %v1794_v56, %v1681_v49  ;;  %v2383_v59 = vadd.f32 %v2382_v11, %v2352_v6 }
 0x2e5   : > { %v2181_v27 = vpop.f32.mrf.mxu1 }
 0x2e6   : > { %v2215_v58 = vadd.f32 %v2181_v27, %v1795_v61 }
 0x2e8   : > { %v2251_v60 = vadd.f32 %v2696_v9, %v2215_v58 }
 0x2ea   : > { %2283 = vst [vmem:[%s3055_s8 + $0xf8] sm:$0xff] %v2251_v60  ;;  %v2315_v15 = vadd.f32 %v2314_v62, %v2251_v60  ;;  %v2353_v53 = vmul.f32 %v2251_v60, %v2251_v60 }
 0x2eb   : > { %2814 = shalt.err (!%p2811_p13)
}
 0x2ec   : > { %s2897_s9 = smov 128   ;;  %s2898_s8 = smov 8   ;;  %v2316_v33 = vrot.slane %v2315_v15, 4  ;;  %v2384_v41 = vadd.f32 %v2383_v59, %v2353_v53  ;;  %v2284_v40 = vld [vmem:[#allocation9] sm:$0x3] }
 0x2ed   : > { %2623 = dma.vmem_to_hbm [thread:$0]  (%p3008_p5), %s2408_s7, 4096, %s2410_s27, %s2395_s16, %s2897_s9, %s2897_s9, %s2898_s8  }
 0x2ee   : > { %v2317_v32 = vadd.f32 %v2316_v33, %v2315_v15  ;;  %v2385_v44 = vrot.slane %v2384_v41, 4  ;;  %s2899_s13 = smov [#allocation9]   ;;  %s2424_s7 = sshll.u32 %s3542_s6, 4  ;;  %s2425_s7 = int_to_ptr.hbm [resolvable:$true] %s2424_s7 }
 0x2ef   : > { %s2422_s14 = sshll.u32 %s2899_s13, 4  ;;  %p3554_p5 = scmp.eq.s32.totalorder %s2956_s25, 1  ;;  %s2423_s14 = int_to_ptr.vmem [resolvable:$true] %s2422_s14 }
 0x2f0   : > { %v2318_v54 = vrot.slane %v2317_v32, 2  ;;  %v2386_v34 = vadd.f32 %v2385_v44, %v2384_v41 }
 0x2f1   : > { %p3555_p0 = pmov %p3554_p5 }
 0x2f2   : > { %v2319_v30 = vadd.f32 %v2318_v54, %v2317_v32  ;;  %v2387_v38 = vrot.slane %v2386_v34, 2 }
 0x2f4   : > { %v2320_v5 = vrot.slane %v2319_v30, 1  ;;  %v2388_v3 = vadd.f32 %v2387_v38, %v2386_v34 }
 0x2f6   : > { %v2389_v55 = vrot.slane %v2388_v3, 1  ;;  %v2321_v46 = vadd.f32 %v2320_v5, %v2319_v30 }
 0x2f8   : > { %v2390_v36 = vadd.f32 %v2389_v55, %v2388_v3 }
 0x2fa   : > { %v2391_v47 = vsel %vm881_vm0, %v2321_v46, %v2390_v36 }
 0x2fb   : > { %v2392_v13 = vadd.f32 %v2391_v47, %v2284_v40 }
 0x2fd   : > { %2393 = vst [vmem:[#allocation9] sm:$0x3] %v2392_v13 }
 0x2fe   : > { %2625 = dma.vmem_to_hbm [thread:$0]  (%p3554_p5), %s2423_s14, 32, %s2425_s7, [#allocation10]  }
 0x2ff   : > { %2868 = dma.done.wait (%p3555_p0), [#allocation10], 32   ;;  %p3556_p3 = pmov %p3555_p0 }
 0x301   : > { %2870 = vsyncadd (%p3556_p3), [#allocation10], 4294967264 }
 0x302 PF: > { %s2441_s27 = sand.u32 1, %s2877_s21   ;;  %p3557_p7 = scmp.ge.s32.totalorder %s2889_s24, 2 }
 0x303   : > { %s2442_s16 = scalar_lea.sflag [#allocation4], %s2441_s27 }
 0x304   : > { %p2641_p10 = pnand %p3557_p7, %p2970_p6 }
 0x306   : > { %p2642_p2 = pneg %p2641_p10 }
 0x308   : > { %2872 = dma.done.wait (%p2642_p2), %s2442_s16, 4096  }
 0x309   : > { %2874 = vsyncadd (%p2642_p2), %s2442_s16, 4294963200  ;;  %p22_p1 = scmp.ge.s32.totalorder %s2998_s18, 4   ;;  %s3558_s21 = smov %s2881_s22 }
 0x30a   : > { %s3559_s22 = smov %s2885_s23  ;;  %s3560_s23 = smov %s3014_s29 }
 0x30b   : > { %s3561_s24 = smov %s2998_s18  ;;  %24 = sbr.rel (!%p22_p1) target bundleno = 7 (0x7), region = 109 }
 0x310   :  { %2448 = vsyncpa [#allocation3], 1 }
 0x311   :  { %2450 = vsyncpa [#allocation3 + $0x1], 1 }
 0x312   :  { %2451 = vsyncpa [#allocation6], 1 }
 0x313   :  { %2452 = vsyncpa [#allocation4], 1 }
 0x314   :  { %2454 = vsyncpa [#allocation4 + $0x1], 1 }
 0x315   :  { %2455 = vsyncpa [#allocation10], 1 }

</bundles_post_ra>
